<compile_context>
chip_gen: v7x
topology: tpu7x:2x2x1
jax: 0.10.0
libtpu: 0.0.40
codegen_flags: <defaults>
</compile_context>

<pallas_src>
import jax
import jax.numpy as jnp
from jax.experimental import pallas as pl
from jax.experimental.pallas import tpu as pltpu

# ---------------- model dimensions (small, consistent with the forward) -----
B = 2            # batch
S = 8            # sequence length
H = 32           # hidden size   (stands in for 768)
NH = 4           # attention heads
HD = H // NH     # head dim
FFN = 64         # FFN inner dim
VOCAB = 50
NUM_CLASSES = 3
NUM_LAYERS = 2
LN_EPS = 1e-5
BS = B * S


# ---------------- in-kernel helpers -----------------------------------------
def _layernorm(x, g, b):
    # x: (rows, H) f32 ; g/b: (1, H) f32
    mu = jnp.mean(x, axis=-1, keepdims=True)
    xc = x - mu
    var = jnp.mean(xc * xc, axis=-1, keepdims=True)
    return xc * jax.lax.rsqrt(var + LN_EPS) * g + b


def _split_heads(t2d):
    # (B*S, H) -> (NH*B, S, HD), head-major batch.
    # Lane slices + leading-axis concat; reshapes split the row dim along the
    # sublane-tile boundary (S == 8) so no lane relayout is required.
    return jnp.concatenate(
        [t2d[:, h * HD:(h + 1) * HD].reshape(B, S, HD) for h in range(NH)],
        axis=0)


def _merge_heads(t3d):
    # (NH*B, S, HD) -> (B*S, H): one lane concat per layer feeding the single
    # K=32 output-projection matmul.
    return jnp.concatenate(
        [t3d[h * B:(h + 1) * B].reshape(BS, HD) for h in range(NH)],
        axis=-1)


# ---------------- fused forward kernel ---------------------------------------
def fused_forward_kernel(emb_ref, embg_ref, embb_ref,
                         wqkv_ref, bqkv_ref, wo_ref, bo_ref,
                         ln1g_ref, ln1b_ref, w1_ref, b1_ref,
                         w2_ref, b2_ref, ln2g_ref, ln2b_ref,
                         cw1_ref, cb1_ref, cw2_ref, cb2_ref,
                         labels_ref,
                         logits_ref, loss_ref):
    scale = 1.0 / (HD ** 0.5)

    # ---- embedding LayerNorm (torch: embeddings.LayerNorm) ------------------
    x = _layernorm(emb_ref[...].astype(jnp.float32),
                   embg_ref[...], embb_ref[...])                      # (BS, H)

    # ---- encoder layers: statically unrolled, everything stays in VMEM ------
    for l in range(NUM_LAYERS):
        # hoist all per-layer parameter reads
        wqkv = wqkv_ref[l]            # (H, 3H)  bf16
        bqkv = bqkv_ref[l]            # (1, 3H)  f32
        wo, bo = wo_ref[l], bo_ref[l]
        ln1g, ln1b = ln1g_ref[l], ln1b_ref[l]
        w1, b1 = w1_ref[l], b1_ref[l]
        w2, b2 = w2_ref[l], b2_ref[l]
        ln2g, ln2b = ln2g_ref[l], ln2b_ref[l]

        # fused Q/K/V projection: one (BS,H)x(H,3H) MXU push
        qkv = jnp.dot(x.astype(jnp.bfloat16), wqkv,
                      preferred_element_type=jnp.float32) + bqkv      # (BS,3H)
        q = _split_heads(qkv[:, 0 * H:1 * H]).astype(jnp.bfloat16)    # (NH*B,S,HD)
        k = _split_heads(qkv[:, 1 * H:2 * H]).astype(jnp.bfloat16)
        v = _split_heads(qkv[:, 2 * H:3 * H]).astype(jnp.bfloat16)

        # batched attention over all heads at once
        sc = jnp.einsum('bqd,bkd->bqk', q, k,
                        preferred_element_type=jnp.float32) * scale   # (NH*B,S,S)
        m = jnp.max(sc, axis=-1, keepdims=True)
        e = jnp.exp(sc - m)
        p = e * pl.reciprocal(jnp.sum(e, axis=-1, keepdims=True), approx=True)
        ctx = jnp.einsum('bqk,bkd->bqd', p.astype(jnp.bfloat16), v,
                         preferred_element_type=jnp.float32)          # (NH*B,S,HD)

        attn = jnp.dot(_merge_heads(ctx).astype(jnp.bfloat16), wo,
                       preferred_element_type=jnp.float32) + bo       # (BS, H)
        x1 = _layernorm(x + attn, ln1g, ln1b)

        hdn = jnp.dot(x1.astype(jnp.bfloat16), w1,
                      preferred_element_type=jnp.float32) + b1        # (BS, FFN)
        hdn = jax.nn.gelu(hdn, approximate=True)                      # f32 VPU/EUP
        ffn = jnp.dot(hdn.astype(jnp.bfloat16), w2,
                      preferred_element_type=jnp.float32) + b2        # (BS, H)
        x = _layernorm(x1 + ffn, ln2g, ln2b)

    # ---- CLS token of the last hidden state + classifier head ---------------
    # torch.stack(hidden_states[-1:],0)[...,0,:].sum(0) == CLS of last layer
    cls = jnp.concatenate([x[b * S:b * S + 1, :] for b in range(B)], axis=0)  # (B,H)
    hid = jnp.tanh(jnp.dot(cls.astype(jnp.bfloat16), cw1_ref[...],
                           preferred_element_type=jnp.float32) + cb1_ref[...])
    logits = jnp.dot(hid.astype(jnp.bfloat16), cw2_ref[...],
                     preferred_element_type=jnp.float32) + cb2_ref[...]       # (B,C)
    logits_ref[...] = logits

    # ---- cross entropy, mean over batch (labels read from SMEM) -------------
    m = jnp.max(logits, axis=-1, keepdims=True)
    lse = m + jnp.log(jnp.sum(jnp.exp(logits - m), axis=-1, keepdims=True))   # (B,1)
    cls_iota = jax.lax.broadcasted_iota(jnp.int32, (B, NUM_CLASSES), 1)
    row_iota = jax.lax.broadcasted_iota(jnp.int32, (B, NUM_CLASSES), 0)
    onehot = jnp.zeros((B, NUM_CLASSES), jnp.float32)
    for b in range(B):                                   # static, B == 2
        onehot = onehot + jnp.where(
            (row_iota == b) & (cls_iota == labels_ref[b]), 1.0, 0.0)
    picked = jnp.sum(onehot * logits, axis=-1, keepdims=True)                 # (B,1)
    loss_ref[...] = jnp.sum(lse - picked, axis=0, keepdims=True) * (1.0 / B)  # (1,1)


# ---------------- wrapper: single grid-less pallas_call ----------------------
def umberto_forward(params, token_ids, labels):
    # Embedding lookup (glue): token + position embeddings, flattened to 2-D.
    emb = jnp.take(params['tok_emb'], token_ids, axis=0) \
        + params['pos_emb'][None, :, :]                   # (B,S,H)
    emb2d = emb.reshape(BS, H)                            # (B*S, H) lane-dense

    vmem = pl.BlockSpec(memory_space=pltpu.MemorySpace.VMEM)
    smem = pl.BlockSpec(memory_space=pltpu.MemorySpace.SMEM)

    logits, loss = pl.pallas_call(
        fused_forward_kernel,
        out_shape=(jax.ShapeDtypeStruct((B, NUM_CLASSES), jnp.float32),
                   jax.ShapeDtypeStruct((1, 1), jnp.float32)),
        in_specs=[vmem] * 19 + [smem],
        out_specs=(vmem, vmem),
    )(emb2d,
      params['emb_ln_g'], params['emb_ln_b'],
      params['wqkv'], params['bqkv'], params['wo'], params['bo'],
      params['ln1_g'], params['ln1_b'], params['w1'], params['b1'],
      params['w2'], params['b2'], params['ln2_g'], params['ln2_b'],
      params['cls_w1'], params['cls_b1'], params['cls_w2'], params['cls_b2'],
      labels.astype(jnp.int32))
    return loss[0, 0], logits


# ---------------- parameter init (deterministic) -----------------------------
def init_params(key):
    def normal(k, shape, scale=0.02):
        return scale * jax.random.normal(k, shape, dtype=jnp.float32)

    keys = jax.random.split(key, 4 + NUM_LAYERS)
    params = {
        'tok_emb': normal(keys[0], (VOCAB, H)),
        'pos_emb': normal(keys[1], (S, H)),
        'emb_ln_g': jnp.ones((1, H), jnp.float32),
        'emb_ln_b': jnp.zeros((1, H), jnp.float32),
        # classifier: Linear(H,H) -> Tanh -> Linear(H, num_classes)
        'cls_w1': normal(keys[2], (H, H)).astype(jnp.bfloat16),
        'cls_b1': jnp.zeros((1, H), jnp.float32),
        'cls_w2': normal(keys[3], (H, NUM_CLASSES)).astype(jnp.bfloat16),
        'cls_b2': jnp.zeros((1, NUM_CLASSES), jnp.float32),
    }

    wqkv, bqkv, wo, bo = [], [], [], []
    ln1g, ln1b, w1, b1, w2, b2, ln2g, ln2b = [], [], [], [], [], [], [], []
    for l in range(NUM_LAYERS):
        lk = jax.random.split(keys[4 + l], 6)
        wq = normal(lk[0], (H, H))
        wk = normal(lk[1], (H, H))
        wv = normal(lk[2], (H, H))
        wqkv.append(jnp.concatenate([wq, wk, wv], axis=1))      # (H, 3H)
        bqkv.append(jnp.zeros((1, 3 * H), jnp.float32))
        wo.append(normal(lk[3], (H, H)))
        bo.append(jnp.zeros((1, H), jnp.float32))
        ln1g.append(jnp.ones((1, H), jnp.float32))
        ln1b.append(jnp.zeros((1, H), jnp.float32))
        w1.append(normal(lk[4], (H, FFN)))
        b1.append(jnp.zeros((1, FFN), jnp.float32))
        w2.append(normal(lk[5], (FFN, H)))
        b2.append(jnp.zeros((1, H), jnp.float32))
        ln2g.append(jnp.ones((1, H), jnp.float32))
        ln2b.append(jnp.zeros((1, H), jnp.float32))

    params.update({
        'wqkv': jnp.stack(wqkv).astype(jnp.bfloat16),   # (L, H, 3H) bf16 MXU operand
        'bqkv': jnp.stack(bqkv),                        # (L, 1, 3H) f32
        'wo': jnp.stack(wo).astype(jnp.bfloat16),
        'bo': jnp.stack(bo),
        'ln1_g': jnp.stack(ln1g), 'ln1_b': jnp.stack(ln1b),
        'w1': jnp.stack(w1).astype(jnp.bfloat16), 'b1': jnp.stack(b1),
        'w2': jnp.stack(w2).astype(jnp.bfloat16), 'b2': jnp.stack(b2),
        'ln2_g': jnp.stack(ln2g), 'ln2_b': jnp.stack(ln2b),
    })
    return params


if __name__ == "__main__":
    key = jax.random.PRNGKey(0)
    pkey, tkey, lkey = jax.random.split(key, 3)

    params = init_params(pkey)
    token_ids = jax.random.randint(tkey, (B, S), 0, VOCAB, dtype=jnp.int32)
    labels = jax.random.randint(lkey, (B,), 0, NUM_CLASSES, dtype=jnp.int32)

    fwd = jax.jit(umberto_forward)
    loss, logits = fwd(params, token_ids, labels)
    jax.block_until_ready((loss, logits))

    assert logits.shape == (B, NUM_CLASSES)
    assert bool(jnp.isfinite(loss)) and bool(jnp.all(jnp.isfinite(logits)))
    print("KERNEL_OK")
</pallas_src>

<mosaic_0001>
module attributes {stable_mosaic.version = 11 : i64} {
  func.func @fused_forward_kernel(%arg0: memref<16x32xf32, #tpu.memory_space<vmem>>, %arg1: memref<1x32xf32, #tpu.memory_space<vmem>>, %arg2: memref<1x32xf32, #tpu.memory_space<vmem>>, %arg3: memref<2x32x96xbf16, #tpu.memory_space<vmem>>, %arg4: memref<2x1x96xf32, #tpu.memory_space<vmem>>, %arg5: memref<2x32x32xbf16, #tpu.memory_space<vmem>>, %arg6: memref<2x1x32xf32, #tpu.memory_space<vmem>>, %arg7: memref<2x1x32xf32, #tpu.memory_space<vmem>>, %arg8: memref<2x1x32xf32, #tpu.memory_space<vmem>>, %arg9: memref<2x32x64xbf16, #tpu.memory_space<vmem>>, %arg10: memref<2x1x64xf32, #tpu.memory_space<vmem>>, %arg11: memref<2x64x32xbf16, #tpu.memory_space<vmem>>, %arg12: memref<2x1x32xf32, #tpu.memory_space<vmem>>, %arg13: memref<2x1x32xf32, #tpu.memory_space<vmem>>, %arg14: memref<2x1x32xf32, #tpu.memory_space<vmem>>, %arg15: memref<32x32xbf16, #tpu.memory_space<vmem>>, %arg16: memref<1x32xf32, #tpu.memory_space<vmem>>, %arg17: memref<32x3xbf16, #tpu.memory_space<vmem>>, %arg18: memref<1x3xf32, #tpu.memory_space<vmem>>, %arg19: memref<2xi32, #tpu.memory_space<smem>>, %arg20: memref<2x3xf32, #tpu.memory_space<vmem>>, %arg21: memref<1x1xf32, #tpu.memory_space<vmem>>) attributes {dimension_semantics = [], scalar_prefetch = 0 : i64, scratch_operands = 0 : i64, tpu.core_type = #tpu.core_type<tc>} {
    %c0 = arith.constant 0 : index
    %c0_0 = arith.constant 0 : index
    %0 = vector.load %arg0[%c0, %c0_0] : memref<16x32xf32, #tpu.memory_space<vmem>>, vector<16x32xf32>
    %c0_1 = arith.constant 0 : index
    %c0_2 = arith.constant 0 : index
    %1 = vector.load %arg1[%c0_1, %c0_2] : memref<1x32xf32, #tpu.memory_space<vmem>>, vector<1x32xf32>
    %c0_3 = arith.constant 0 : index
    %c0_4 = arith.constant 0 : index
    %2 = vector.load %arg2[%c0_3, %c0_4] : memref<1x32xf32, #tpu.memory_space<vmem>>, vector<1x32xf32>
    %cst = arith.constant dense<0.000000e+00> : vector<16xf32>
    %3 = vector.multi_reduction <add>, %0, %cst [1] : vector<16x32xf32> to vector<16xf32>
    %4 = vector.shape_cast %3 : vector<16xf32> to vector<16x1xf32>
    %cst_5 = arith.constant 3.200000e+01 : f32
    %5 = vector.broadcast %cst_5 : f32 to vector<16x1xf32>
    %6 = arith.divf %4, %5 : vector<16x1xf32>
    %7 = vector.broadcast %6 : vector<16x1xf32> to vector<16x32xf32>
    %8 = arith.subf %0, %7 : vector<16x32xf32>
    %9 = arith.mulf %8, %8 : vector<16x32xf32>
    %cst_6 = arith.constant dense<0.000000e+00> : vector<16xf32>
    %10 = vector.multi_reduction <add>, %9, %cst_6 [1] : vector<16x32xf32> to vector<16xf32>
    %11 = vector.shape_cast %10 : vector<16xf32> to vector<16x1xf32>
    %cst_7 = arith.constant 3.200000e+01 : f32
    %12 = vector.broadcast %cst_7 : f32 to vector<16x1xf32>
    %13 = arith.divf %11, %12 : vector<16x1xf32>
    %cst_8 = arith.constant 9.99999974E-6 : f32
    %14 = vector.broadcast %cst_8 : f32 to vector<16x1xf32>
    %15 = arith.addf %13, %14 : vector<16x1xf32>
    %16 = math.rsqrt %15 : vector<16x1xf32>
    %17 = vector.broadcast %16 : vector<16x1xf32> to vector<16x32xf32>
    %18 = arith.mulf %8, %17 : vector<16x32xf32>
    %19 = vector.broadcast %1 : vector<1x32xf32> to vector<16x32xf32>
    %20 = arith.mulf %18, %19 : vector<16x32xf32>
    %21 = vector.broadcast %2 : vector<1x32xf32> to vector<16x32xf32>
    %22 = arith.addf %20, %21 : vector<16x32xf32>
    %c0_9 = arith.constant 0 : index
    %c0_10 = arith.constant 0 : index
    %c0_11 = arith.constant 0 : index
    %23 = vector.load %arg3[%c0_9, %c0_10, %c0_11] : memref<2x32x96xbf16, #tpu.memory_space<vmem>>, vector<1x32x96xbf16>
    %24 = vector.shape_cast %23 : vector<1x32x96xbf16> to vector<32x96xbf16>
    %c0_12 = arith.constant 0 : index
    %c0_13 = arith.constant 0 : index
    %c0_14 = arith.constant 0 : index
    %25 = vector.load %arg4[%c0_12, %c0_13, %c0_14] : memref<2x1x96xf32, #tpu.memory_space<vmem>>, vector<1x1x96xf32>
    %26 = vector.shape_cast %25 : vector<1x1x96xf32> to vector<1x96xf32>
    %c0_15 = arith.constant 0 : index
    %c0_16 = arith.constant 0 : index
    %c0_17 = arith.constant 0 : index
    %27 = vector.load %arg5[%c0_15, %c0_16, %c0_17] : memref<2x32x32xbf16, #tpu.memory_space<vmem>>, vector<1x32x32xbf16>
    %28 = vector.shape_cast %27 : vector<1x32x32xbf16> to vector<32x32xbf16>
    %c0_18 = arith.constant 0 : index
    %c0_19 = arith.constant 0 : index
    %c0_20 = arith.constant 0 : index
    %29 = vector.load %arg6[%c0_18, %c0_19, %c0_20] : memref<2x1x32xf32, #tpu.memory_space<vmem>>, vector<1x1x32xf32>
    %30 = vector.shape_cast %29 : vector<1x1x32xf32> to vector<1x32xf32>
    %c0_21 = arith.constant 0 : index
    %c0_22 = arith.constant 0 : index
    %c0_23 = arith.constant 0 : index
    %31 = vector.load %arg7[%c0_21, %c0_22, %c0_23] : memref<2x1x32xf32, #tpu.memory_space<vmem>>, vector<1x1x32xf32>
    %32 = vector.shape_cast %31 : vector<1x1x32xf32> to vector<1x32xf32>
    %c0_24 = arith.constant 0 : index
    %c0_25 = arith.constant 0 : index
    %c0_26 = arith.constant 0 : index
    %33 = vector.load %arg8[%c0_24, %c0_25, %c0_26] : memref<2x1x32xf32, #tpu.memory_space<vmem>>, vector<1x1x32xf32>
    %34 = vector.shape_cast %33 : vector<1x1x32xf32> to vector<1x32xf32>
    %c0_27 = arith.constant 0 : index
    %c0_28 = arith.constant 0 : index
    %c0_29 = arith.constant 0 : index
    %35 = vector.load %arg9[%c0_27, %c0_28, %c0_29] : memref<2x32x64xbf16, #tpu.memory_space<vmem>>, vector<1x32x64xbf16>
    %36 = vector.shape_cast %35 : vector<1x32x64xbf16> to vector<32x64xbf16>
    %c0_30 = arith.constant 0 : index
    %c0_31 = arith.constant 0 : index
    %c0_32 = arith.constant 0 : index
    %37 = vector.load %arg10[%c0_30, %c0_31, %c0_32] : memref<2x1x64xf32, #tpu.memory_space<vmem>>, vector<1x1x64xf32>
    %38 = vector.shape_cast %37 : vector<1x1x64xf32> to vector<1x64xf32>
    %c0_33 = arith.constant 0 : index
    %c0_34 = arith.constant 0 : index
    %c0_35 = arith.constant 0 : index
    %39 = vector.load %arg11[%c0_33, %c0_34, %c0_35] : memref<2x64x32xbf16, #tpu.memory_space<vmem>>, vector<1x64x32xbf16>
    %40 = vector.shape_cast %39 : vector<1x64x32xbf16> to vector<64x32xbf16>
    %c0_36 = arith.constant 0 : index
    %c0_37 = arith.constant 0 : index
    %c0_38 = arith.constant 0 : index
    %41 = vector.load %arg12[%c0_36, %c0_37, %c0_38] : memref<2x1x32xf32, #tpu.memory_space<vmem>>, vector<1x1x32xf32>
    %42 = vector.shape_cast %41 : vector<1x1x32xf32> to vector<1x32xf32>
    %c0_39 = arith.constant 0 : index
    %c0_40 = arith.constant 0 : index
    %c0_41 = arith.constant 0 : index
    %43 = vector.load %arg13[%c0_39, %c0_40, %c0_41] : memref<2x1x32xf32, #tpu.memory_space<vmem>>, vector<1x1x32xf32>
    %44 = vector.shape_cast %43 : vector<1x1x32xf32> to vector<1x32xf32>
    %c0_42 = arith.constant 0 : index
    %c0_43 = arith.constant 0 : index
    %c0_44 = arith.constant 0 : index
    %45 = vector.load %arg14[%c0_42, %c0_43, %c0_44] : memref<2x1x32xf32, #tpu.memory_space<vmem>>, vector<1x1x32xf32>
    %46 = vector.shape_cast %45 : vector<1x1x32xf32> to vector<1x32xf32>
    %47 = arith.truncf %22 : vector<16x32xf32> to vector<16x32xbf16>
    %cst_45 = arith.constant dense<0.000000e+00> : vector<16x96xf32>
    %48 = tpu.matmul %47, %24, %cst_45 {dimension_numbers = #tpu.dot_dimension_numbers<[1], [0], [0], [1], [0, 0, 1, 1], [], []>} : vector<16x32xbf16>, vector<32x96xbf16>, vector<16x96xf32> -> vector<16x96xf32>
    %49 = vector.broadcast %26 : vector<1x96xf32> to vector<16x96xf32>
    %50 = arith.addf %48, %49 : vector<16x96xf32>
    %51 = vector.extract_strided_slice %50 {offsets = [0, 0], sizes = [16, 32], strides = [1, 1]} : vector<16x96xf32> to vector<16x32xf32>
    %52 = vector.extract_strided_slice %51 {offsets = [0, 0], sizes = [16, 8], strides = [1, 1]} : vector<16x32xf32> to vector<16x8xf32>
    %53 = vector.shape_cast %52 : vector<16x8xf32> to vector<2x8x8xf32>
    %54 = vector.extract_strided_slice %51 {offsets = [0, 8], sizes = [16, 8], strides = [1, 1]} : vector<16x32xf32> to vector<16x8xf32>
    %55 = vector.shape_cast %54 : vector<16x8xf32> to vector<2x8x8xf32>
    %56 = vector.extract_strided_slice %51 {offsets = [0, 16], sizes = [16, 8], strides = [1, 1]} : vector<16x32xf32> to vector<16x8xf32>
    %57 = vector.shape_cast %56 : vector<16x8xf32> to vector<2x8x8xf32>
    %58 = vector.extract_strided_slice %51 {offsets = [0, 24], sizes = [16, 8], strides = [1, 1]} : vector<16x32xf32> to vector<16x8xf32>
    %59 = vector.shape_cast %58 : vector<16x8xf32> to vector<2x8x8xf32>
    %60 = tpu.concatenate %53, %55, %57, %59 in 0 : vector<2x8x8xf32>, vector<2x8x8xf32>, vector<2x8x8xf32>, vector<2x8x8xf32> -> vector<8x8x8xf32>
    %61 = arith.truncf %60 : vector<8x8x8xf32> to vector<8x8x8xbf16>
    %62 = vector.extract_strided_slice %50 {offsets = [0, 32], sizes = [16, 32], strides = [1, 1]} : vector<16x96xf32> to vector<16x32xf32>
    %63 = vector.extract_strided_slice %62 {offsets = [0, 0], sizes = [16, 8], strides = [1, 1]} : vector<16x32xf32> to vector<16x8xf32>
    %64 = vector.shape_cast %63 : vector<16x8xf32> to vector<2x8x8xf32>
    %65 = vector.extract_strided_slice %62 {offsets = [0, 8], sizes = [16, 8], strides = [1, 1]} : vector<16x32xf32> to vector<16x8xf32>
    %66 = vector.shape_cast %65 : vector<16x8xf32> to vector<2x8x8xf32>
    %67 = vector.extract_strided_slice %62 {offsets = [0, 16], sizes = [16, 8], strides = [1, 1]} : vector<16x32xf32> to vector<16x8xf32>
    %68 = vector.shape_cast %67 : vector<16x8xf32> to vector<2x8x8xf32>
    %69 = vector.extract_strided_slice %62 {offsets = [0, 24], sizes = [16, 8], strides = [1, 1]} : vector<16x32xf32> to vector<16x8xf32>
    %70 = vector.shape_cast %69 : vector<16x8xf32> to vector<2x8x8xf32>
    %71 = tpu.concatenate %64, %66, %68, %70 in 0 : vector<2x8x8xf32>, vector<2x8x8xf32>, vector<2x8x8xf32>, vector<2x8x8xf32> -> vector<8x8x8xf32>
    %72 = arith.truncf %71 : vector<8x8x8xf32> to vector<8x8x8xbf16>
    %73 = vector.extract_strided_slice %50 {offsets = [0, 64], sizes = [16, 32], strides = [1, 1]} : vector<16x96xf32> to vector<16x32xf32>
    %74 = vector.extract_strided_slice %73 {offsets = [0, 0], sizes = [16, 8], strides = [1, 1]} : vector<16x32xf32> to vector<16x8xf32>
    %75 = vector.shape_cast %74 : vector<16x8xf32> to vector<2x8x8xf32>
    %76 = vector.extract_strided_slice %73 {offsets = [0, 8], sizes = [16, 8], strides = [1, 1]} : vector<16x32xf32> to vector<16x8xf32>
    %77 = vector.shape_cast %76 : vector<16x8xf32> to vector<2x8x8xf32>
    %78 = vector.extract_strided_slice %73 {offsets = [0, 16], sizes = [16, 8], strides = [1, 1]} : vector<16x32xf32> to vector<16x8xf32>
    %79 = vector.shape_cast %78 : vector<16x8xf32> to vector<2x8x8xf32>
    %80 = vector.extract_strided_slice %73 {offsets = [0, 24], sizes = [16, 8], strides = [1, 1]} : vector<16x32xf32> to vector<16x8xf32>
    %81 = vector.shape_cast %80 : vector<16x8xf32> to vector<2x8x8xf32>
    %82 = tpu.concatenate %75, %77, %79, %81 in 0 : vector<2x8x8xf32>, vector<2x8x8xf32>, vector<2x8x8xf32>, vector<2x8x8xf32> -> vector<8x8x8xf32>
    %83 = arith.truncf %82 : vector<8x8x8xf32> to vector<8x8x8xbf16>
    "tpu.trace_start"() <{level = 10 : i32, message = "bqd,bkd->bqk"}> : () -> ()
    %cst_46 = arith.constant dense<0.000000e+00> : vector<8x8x8xf32>
    %84 = tpu.matmul %61, %72, %cst_46 {dimension_numbers = #tpu.dot_dimension_numbers<[2], [2], [1], [1], [0, 0, 0, 1, 1, 1], [0], [0]>} : vector<8x8x8xbf16>, vector<8x8x8xbf16>, vector<8x8x8xf32> -> vector<8x8x8xf32>
    "tpu.trace_stop"() : () -> ()
    %cst_47 = arith.constant 0.353553385 : f32
    %85 = vector.broadcast %cst_47 : f32 to vector<8x8x8xf32>
    %86 = arith.mulf %84, %85 : vector<8x8x8xf32>
    %cst_48 = arith.constant dense<0xFF800000> : vector<8x8xf32>
    %87 = vector.multi_reduction <maximumf>, %86, %cst_48 [2] : vector<8x8x8xf32> to vector<8x8xf32>
    %88 = vector.shape_cast %87 : vector<8x8xf32> to vector<8x8x1xf32>
    %89 = vector.broadcast %88 : vector<8x8x1xf32> to vector<8x8x8xf32>
    %90 = arith.subf %86, %89 : vector<8x8x8xf32>
    %91 = math.exp %90 : vector<8x8x8xf32>
    %cst_49 = arith.constant dense<0.000000e+00> : vector<8x8xf32>
    %92 = vector.multi_reduction <add>, %91, %cst_49 [2] : vector<8x8x8xf32> to vector<8x8xf32>
    %93 = vector.shape_cast %92 : vector<8x8xf32> to vector<8x8x1xf32>
    %94 = tpu.reciprocal %93 {approx = true} : vector<8x8x1xf32> -> vector<8x8x1xf32>
    %95 = vector.broadcast %94 : vector<8x8x1xf32> to vector<8x8x8xf32>
    %96 = arith.mulf %91, %95 : vector<8x8x8xf32>
    %97 = arith.truncf %96 : vector<8x8x8xf32> to vector<8x8x8xbf16>
    "tpu.trace_start"() <{level = 10 : i32, message = "bqk,bkd->bqd"}> : () -> ()
    %cst_50 = arith.constant dense<0.000000e+00> : vector<8x8x8xf32>
    %98 = tpu.matmul %97, %83, %cst_50 {dimension_numbers = #tpu.dot_dimension_numbers<[2], [1], [1], [2], [0, 0, 0, 1, 1, 2], [0], [0]>} : vector<8x8x8xbf16>, vector<8x8x8xbf16>, vector<8x8x8xf32> -> vector<8x8x8xf32>
    "tpu.trace_stop"() : () -> ()
    %99 = vector.extract_strided_slice %98 {offsets = [0, 0, 0], sizes = [2, 8, 8], strides = [1, 1, 1]} : vector<8x8x8xf32> to vector<2x8x8xf32>
    %100 = vector.shape_cast %99 : vector<2x8x8xf32> to vector<16x8xf32>
    %101 = vector.extract_strided_slice %98 {offsets = [2, 0, 0], sizes = [2, 8, 8], strides = [1, 1, 1]} : vector<8x8x8xf32> to vector<2x8x8xf32>
    %102 = vector.shape_cast %101 : vector<2x8x8xf32> to vector<16x8xf32>
    %103 = vector.extract_strided_slice %98 {offsets = [4, 0, 0], sizes = [2, 8, 8], strides = [1, 1, 1]} : vector<8x8x8xf32> to vector<2x8x8xf32>
    %104 = vector.shape_cast %103 : vector<2x8x8xf32> to vector<16x8xf32>
    %105 = vector.extract_strided_slice %98 {offsets = [6, 0, 0], sizes = [2, 8, 8], strides = [1, 1, 1]} : vector<8x8x8xf32> to vector<2x8x8xf32>
    %106 = vector.shape_cast %105 : vector<2x8x8xf32> to vector<16x8xf32>
    %107 = tpu.concatenate %100, %102, %104, %106 in 1 : vector<16x8xf32>, vector<16x8xf32>, vector<16x8xf32>, vector<16x8xf32> -> vector<16x32xf32>
    %108 = arith.truncf %107 : vector<16x32xf32> to vector<16x32xbf16>
    %cst_51 = arith.constant dense<0.000000e+00> : vector<16x32xf32>
    %109 = tpu.matmul %108, %28, %cst_51 {dimension_numbers = #tpu.dot_dimension_numbers<[1], [0], [0], [1], [0, 0, 1, 1], [], []>} : vector<16x32xbf16>, vector<32x32xbf16>, vector<16x32xf32> -> vector<16x32xf32>
    %110 = vector.broadcast %30 : vector<1x32xf32> to vector<16x32xf32>
    %111 = arith.addf %109, %110 : vector<16x32xf32>
    %112 = arith.addf %22, %111 : vector<16x32xf32>
    %cst_52 = arith.constant dense<0.000000e+00> : vector<16xf32>
    %113 = vector.multi_reduction <add>, %112, %cst_52 [1] : vector<16x32xf32> to vector<16xf32>
    %114 = vector.shape_cast %113 : vector<16xf32> to vector<16x1xf32>
    %cst_53 = arith.constant 3.200000e+01 : f32
    %115 = vector.broadcast %cst_53 : f32 to vector<16x1xf32>
    %116 = arith.divf %114, %115 : vector<16x1xf32>
    %117 = vector.broadcast %116 : vector<16x1xf32> to vector<16x32xf32>
    %118 = arith.subf %112, %117 : vector<16x32xf32>
    %119 = arith.mulf %118, %118 : vector<16x32xf32>
    %cst_54 = arith.constant dense<0.000000e+00> : vector<16xf32>
    %120 = vector.multi_reduction <add>, %119, %cst_54 [1] : vector<16x32xf32> to vector<16xf32>
    %121 = vector.shape_cast %120 : vector<16xf32> to vector<16x1xf32>
    %cst_55 = arith.constant 3.200000e+01 : f32
    %122 = vector.broadcast %cst_55 : f32 to vector<16x1xf32>
    %123 = arith.divf %121, %122 : vector<16x1xf32>
    %cst_56 = arith.constant 9.99999974E-6 : f32
    %124 = vector.broadcast %cst_56 : f32 to vector<16x1xf32>
    %125 = arith.addf %123, %124 : vector<16x1xf32>
    %126 = math.rsqrt %125 : vector<16x1xf32>
    %127 = vector.broadcast %126 : vector<16x1xf32> to vector<16x32xf32>
    %128 = arith.mulf %118, %127 : vector<16x32xf32>
    %129 = vector.broadcast %32 : vector<1x32xf32> to vector<16x32xf32>
    %130 = arith.mulf %128, %129 : vector<16x32xf32>
    %131 = vector.broadcast %34 : vector<1x32xf32> to vector<16x32xf32>
    %132 = arith.addf %130, %131 : vector<16x32xf32>
    %133 = arith.truncf %132 : vector<16x32xf32> to vector<16x32xbf16>
    %cst_57 = arith.constant dense<0.000000e+00> : vector<16x64xf32>
    %134 = tpu.matmul %133, %36, %cst_57 {dimension_numbers = #tpu.dot_dimension_numbers<[1], [0], [0], [1], [0, 0, 1, 1], [], []>} : vector<16x32xbf16>, vector<32x64xbf16>, vector<16x64xf32> -> vector<16x64xf32>
    %135 = vector.broadcast %38 : vector<1x64xf32> to vector<16x64xf32>
    %136 = arith.addf %134, %135 : vector<16x64xf32>
    %137 = arith.mulf %136, %136 : vector<16x64xf32>
    %138 = arith.mulf %136, %137 : vector<16x64xf32>
    %cst_58 = arith.constant 4.471500e-02 : f32
    %139 = vector.broadcast %cst_58 : f32 to vector<16x64xf32>
    %140 = arith.mulf %139, %138 : vector<16x64xf32>
    %141 = arith.addf %136, %140 : vector<16x64xf32>
    %cst_59 = arith.constant 0.797884583 : f32
    %142 = vector.broadcast %cst_59 : f32 to vector<16x64xf32>
    %143 = arith.mulf %142, %141 : vector<16x64xf32>
    %144 = math.tanh %143 : vector<16x64xf32>
    %cst_60 = arith.constant 1.000000e+00 : f32
    %145 = vector.broadcast %cst_60 : f32 to vector<16x64xf32>
    %146 = arith.addf %145, %144 : vector<16x64xf32>
    %cst_61 = arith.constant 5.000000e-01 : f32
    %147 = vector.broadcast %cst_61 : f32 to vector<16x64xf32>
    %148 = arith.mulf %147, %146 : vector<16x64xf32>
    %149 = arith.mulf %136, %148 : vector<16x64xf32>
    %150 = arith.truncf %149 : vector<16x64xf32> to vector<16x64xbf16>
    %cst_62 = arith.constant dense<0.000000e+00> : vector<16x32xf32>
    %151 = tpu.matmul %150, %40, %cst_62 {dimension_numbers = #tpu.dot_dimension_numbers<[1], [0], [0], [1], [0, 0, 1, 1], [], []>} : vector<16x64xbf16>, vector<64x32xbf16>, vector<16x32xf32> -> vector<16x32xf32>
    %152 = vector.broadcast %42 : vector<1x32xf32> to vector<16x32xf32>
    %153 = arith.addf %151, %152 : vector<16x32xf32>
    %154 = arith.addf %132, %153 : vector<16x32xf32>
    %cst_63 = arith.constant dense<0.000000e+00> : vector<16xf32>
    %155 = vector.multi_reduction <add>, %154, %cst_63 [1] : vector<16x32xf32> to vector<16xf32>
    %156 = vector.shape_cast %155 : vector<16xf32> to vector<16x1xf32>
    %cst_64 = arith.constant 3.200000e+01 : f32
    %157 = vector.broadcast %cst_64 : f32 to vector<16x1xf32>
    %158 = arith.divf %156, %157 : vector<16x1xf32>
    %159 = vector.broadcast %158 : vector<16x1xf32> to vector<16x32xf32>
    %160 = arith.subf %154, %159 : vector<16x32xf32>
    %161 = arith.mulf %160, %160 : vector<16x32xf32>
    %cst_65 = arith.constant dense<0.000000e+00> : vector<16xf32>
    %162 = vector.multi_reduction <add>, %161, %cst_65 [1] : vector<16x32xf32> to vector<16xf32>
    %163 = vector.shape_cast %162 : vector<16xf32> to vector<16x1xf32>
    %cst_66 = arith.constant 3.200000e+01 : f32
    %164 = vector.broadcast %cst_66 : f32 to vector<16x1xf32>
    %165 = arith.divf %163, %164 : vector<16x1xf32>
    %cst_67 = arith.constant 9.99999974E-6 : f32
    %166 = vector.broadcast %cst_67 : f32 to vector<16x1xf32>
    %167 = arith.addf %165, %166 : vector<16x1xf32>
    %168 = math.rsqrt %167 : vector<16x1xf32>
    %169 = vector.broadcast %168 : vector<16x1xf32> to vector<16x32xf32>
    %170 = arith.mulf %160, %169 : vector<16x32xf32>
    %171 = vector.broadcast %44 : vector<1x32xf32> to vector<16x32xf32>
    %172 = arith.mulf %170, %171 : vector<16x32xf32>
    %173 = vector.broadcast %46 : vector<1x32xf32> to vector<16x32xf32>
    %174 = arith.addf %172, %173 : vector<16x32xf32>
    %c1 = arith.constant 1 : index
    %c0_68 = arith.constant 0 : index
    %c0_69 = arith.constant 0 : index
    %175 = vector.load %arg3[%c1, %c0_68, %c0_69] : memref<2x32x96xbf16, #tpu.memory_space<vmem>>, vector<1x32x96xbf16>
    %176 = vector.shape_cast %175 : vector<1x32x96xbf16> to vector<32x96xbf16>
    %c1_70 = arith.constant 1 : index
    %c0_71 = arith.constant 0 : index
    %c0_72 = arith.constant 0 : index
    %177 = vector.load %arg4[%c1_70, %c0_71, %c0_72] : memref<2x1x96xf32, #tpu.memory_space<vmem>>, vector<1x1x96xf32>
    %178 = vector.shape_cast %177 : vector<1x1x96xf32> to vector<1x96xf32>
    %c1_73 = arith.constant 1 : index
    %c0_74 = arith.constant 0 : index
    %c0_75 = arith.constant 0 : index
    %179 = vector.load %arg5[%c1_73, %c0_74, %c0_75] : memref<2x32x32xbf16, #tpu.memory_space<vmem>>, vector<1x32x32xbf16>
    %180 = vector.shape_cast %179 : vector<1x32x32xbf16> to vector<32x32xbf16>
    %c1_76 = arith.constant 1 : index
    %c0_77 = arith.constant 0 : index
    %c0_78 = arith.constant 0 : index
    %181 = vector.load %arg6[%c1_76, %c0_77, %c0_78] : memref<2x1x32xf32, #tpu.memory_space<vmem>>, vector<1x1x32xf32>
    %182 = vector.shape_cast %181 : vector<1x1x32xf32> to vector<1x32xf32>
    %c1_79 = arith.constant 1 : index
    %c0_80 = arith.constant 0 : index
    %c0_81 = arith.constant 0 : index
    %183 = vector.load %arg7[%c1_79, %c0_80, %c0_81] : memref<2x1x32xf32, #tpu.memory_space<vmem>>, vector<1x1x32xf32>
    %184 = vector.shape_cast %183 : vector<1x1x32xf32> to vector<1x32xf32>
    %c1_82 = arith.constant 1 : index
    %c0_83 = arith.constant 0 : index
    %c0_84 = arith.constant 0 : index
    %185 = vector.load %arg8[%c1_82, %c0_83, %c0_84] : memref<2x1x32xf32, #tpu.memory_space<vmem>>, vector<1x1x32xf32>
    %186 = vector.shape_cast %185 : vector<1x1x32xf32> to vector<1x32xf32>
    %c1_85 = arith.constant 1 : index
    %c0_86 = arith.constant 0 : index
    %c0_87 = arith.constant 0 : index
    %187 = vector.load %arg9[%c1_85, %c0_86, %c0_87] : memref<2x32x64xbf16, #tpu.memory_space<vmem>>, vector<1x32x64xbf16>
    %188 = vector.shape_cast %187 : vector<1x32x64xbf16> to vector<32x64xbf16>
    %c1_88 = arith.constant 1 : index
    %c0_89 = arith.constant 0 : index
    %c0_90 = arith.constant 0 : index
    %189 = vector.load %arg10[%c1_88, %c0_89, %c0_90] : memref<2x1x64xf32, #tpu.memory_space<vmem>>, vector<1x1x64xf32>
    %190 = vector.shape_cast %189 : vector<1x1x64xf32> to vector<1x64xf32>
    %c1_91 = arith.constant 1 : index
    %c0_92 = arith.constant 0 : index
    %c0_93 = arith.constant 0 : index
    %191 = vector.load %arg11[%c1_91, %c0_92, %c0_93] : memref<2x64x32xbf16, #tpu.memory_space<vmem>>, vector<1x64x32xbf16>
    %192 = vector.shape_cast %191 : vector<1x64x32xbf16> to vector<64x32xbf16>
    %c1_94 = arith.constant 1 : index
    %c0_95 = arith.constant 0 : index
    %c0_96 = arith.constant 0 : index
    %193 = vector.load %arg12[%c1_94, %c0_95, %c0_96] : memref<2x1x32xf32, #tpu.memory_space<vmem>>, vector<1x1x32xf32>
    %194 = vector.shape_cast %193 : vector<1x1x32xf32> to vector<1x32xf32>
    %c1_97 = arith.constant 1 : index
    %c0_98 = arith.constant 0 : index
    %c0_99 = arith.constant 0 : index
    %195 = vector.load %arg13[%c1_97, %c0_98, %c0_99] : memref<2x1x32xf32, #tpu.memory_space<vmem>>, vector<1x1x32xf32>
    %196 = vector.shape_cast %195 : vector<1x1x32xf32> to vector<1x32xf32>
    %c1_100 = arith.constant 1 : index
    %c0_101 = arith.constant 0 : index
    %c0_102 = arith.constant 0 : index
    %197 = vector.load %arg14[%c1_100, %c0_101, %c0_102] : memref<2x1x32xf32, #tpu.memory_space<vmem>>, vector<1x1x32xf32>
    %198 = vector.shape_cast %197 : vector<1x1x32xf32> to vector<1x32xf32>
    %199 = arith.truncf %174 : vector<16x32xf32> to vector<16x32xbf16>
    %cst_103 = arith.constant dense<0.000000e+00> : vector<16x96xf32>
    %200 = tpu.matmul %199, %176, %cst_103 {dimension_numbers = #tpu.dot_dimension_numbers<[1], [0], [0], [1], [0, 0, 1, 1], [], []>} : vector<16x32xbf16>, vector<32x96xbf16>, vector<16x96xf32> -> vector<16x96xf32>
    %201 = vector.broadcast %178 : vector<1x96xf32> to vector<16x96xf32>
    %202 = arith.addf %200, %201 : vector<16x96xf32>
    %203 = vector.extract_strided_slice %202 {offsets = [0, 0], sizes = [16, 32], strides = [1, 1]} : vector<16x96xf32> to vector<16x32xf32>
    %204 = vector.extract_strided_slice %203 {offsets = [0, 0], sizes = [16, 8], strides = [1, 1]} : vector<16x32xf32> to vector<16x8xf32>
    %205 = vector.shape_cast %204 : vector<16x8xf32> to vector<2x8x8xf32>
    %206 = vector.extract_strided_slice %203 {offsets = [0, 8], sizes = [16, 8], strides = [1, 1]} : vector<16x32xf32> to vector<16x8xf32>
    %207 = vector.shape_cast %206 : vector<16x8xf32> to vector<2x8x8xf32>
    %208 = vector.extract_strided_slice %203 {offsets = [0, 16], sizes = [16, 8], strides = [1, 1]} : vector<16x32xf32> to vector<16x8xf32>
    %209 = vector.shape_cast %208 : vector<16x8xf32> to vector<2x8x8xf32>
    %210 = vector.extract_strided_slice %203 {offsets = [0, 24], sizes = [16, 8], strides = [1, 1]} : vector<16x32xf32> to vector<16x8xf32>
    %211 = vector.shape_cast %210 : vector<16x8xf32> to vector<2x8x8xf32>
    %212 = tpu.concatenate %205, %207, %209, %211 in 0 : vector<2x8x8xf32>, vector<2x8x8xf32>, vector<2x8x8xf32>, vector<2x8x8xf32> -> vector<8x8x8xf32>
    %213 = arith.truncf %212 : vector<8x8x8xf32> to vector<8x8x8xbf16>
    %214 = vector.extract_strided_slice %202 {offsets = [0, 32], sizes = [16, 32], strides = [1, 1]} : vector<16x96xf32> to vector<16x32xf32>
    %215 = vector.extract_strided_slice %214 {offsets = [0, 0], sizes = [16, 8], strides = [1, 1]} : vector<16x32xf32> to vector<16x8xf32>
    %216 = vector.shape_cast %215 : vector<16x8xf32> to vector<2x8x8xf32>
    %217 = vector.extract_strided_slice %214 {offsets = [0, 8], sizes = [16, 8], strides = [1, 1]} : vector<16x32xf32> to vector<16x8xf32>
    %218 = vector.shape_cast %217 : vector<16x8xf32> to vector<2x8x8xf32>
    %219 = vector.extract_strided_slice %214 {offsets = [0, 16], sizes = [16, 8], strides = [1, 1]} : vector<16x32xf32> to vector<16x8xf32>
    %220 = vector.shape_cast %219 : vector<16x8xf32> to vector<2x8x8xf32>
    %221 = vector.extract_strided_slice %214 {offsets = [0, 24], sizes = [16, 8], strides = [1, 1]} : vector<16x32xf32> to vector<16x8xf32>
    %222 = vector.shape_cast %221 : vector<16x8xf32> to vector<2x8x8xf32>
    %223 = tpu.concatenate %216, %218, %220, %222 in 0 : vector<2x8x8xf32>, vector<2x8x8xf32>, vector<2x8x8xf32>, vector<2x8x8xf32> -> vector<8x8x8xf32>
    %224 = arith.truncf %223 : vector<8x8x8xf32> to vector<8x8x8xbf16>
    %225 = vector.extract_strided_slice %202 {offsets = [0, 64], sizes = [16, 32], strides = [1, 1]} : vector<16x96xf32> to vector<16x32xf32>
    %226 = vector.extract_strided_slice %225 {offsets = [0, 0], sizes = [16, 8], strides = [1, 1]} : vector<16x32xf32> to vector<16x8xf32>
    %227 = vector.shape_cast %226 : vector<16x8xf32> to vector<2x8x8xf32>
    %228 = vector.extract_strided_slice %225 {offsets = [0, 8], sizes = [16, 8], strides = [1, 1]} : vector<16x32xf32> to vector<16x8xf32>
    %229 = vector.shape_cast %228 : vector<16x8xf32> to vector<2x8x8xf32>
    %230 = vector.extract_strided_slice %225 {offsets = [0, 16], sizes = [16, 8], strides = [1, 1]} : vector<16x32xf32> to vector<16x8xf32>
    %231 = vector.shape_cast %230 : vector<16x8xf32> to vector<2x8x8xf32>
    %232 = vector.extract_strided_slice %225 {offsets = [0, 24], sizes = [16, 8], strides = [1, 1]} : vector<16x32xf32> to vector<16x8xf32>
    %233 = vector.shape_cast %232 : vector<16x8xf32> to vector<2x8x8xf32>
    %234 = tpu.concatenate %227, %229, %231, %233 in 0 : vector<2x8x8xf32>, vector<2x8x8xf32>, vector<2x8x8xf32>, vector<2x8x8xf32> -> vector<8x8x8xf32>
    %235 = arith.truncf %234 : vector<8x8x8xf32> to vector<8x8x8xbf16>
    "tpu.trace_start"() <{level = 10 : i32, message = "bqd,bkd->bqk"}> : () -> ()
    %cst_104 = arith.constant dense<0.000000e+00> : vector<8x8x8xf32>
    %236 = tpu.matmul %213, %224, %cst_104 {dimension_numbers = #tpu.dot_dimension_numbers<[2], [2], [1], [1], [0, 0, 0, 1, 1, 1], [0], [0]>} : vector<8x8x8xbf16>, vector<8x8x8xbf16>, vector<8x8x8xf32> -> vector<8x8x8xf32>
    "tpu.trace_stop"() : () -> ()
    %cst_105 = arith.constant 0.353553385 : f32
    %237 = vector.broadcast %cst_105 : f32 to vector<8x8x8xf32>
    %238 = arith.mulf %236, %237 : vector<8x8x8xf32>
    %cst_106 = arith.constant dense<0xFF800000> : vector<8x8xf32>
    %239 = vector.multi_reduction <maximumf>, %238, %cst_106 [2] : vector<8x8x8xf32> to vector<8x8xf32>
    %240 = vector.shape_cast %239 : vector<8x8xf32> to vector<8x8x1xf32>
    %241 = vector.broadcast %240 : vector<8x8x1xf32> to vector<8x8x8xf32>
    %242 = arith.subf %238, %241 : vector<8x8x8xf32>
    %243 = math.exp %242 : vector<8x8x8xf32>
    %cst_107 = arith.constant dense<0.000000e+00> : vector<8x8xf32>
    %244 = vector.multi_reduction <add>, %243, %cst_107 [2] : vector<8x8x8xf32> to vector<8x8xf32>
    %245 = vector.shape_cast %244 : vector<8x8xf32> to vector<8x8x1xf32>
    %246 = tpu.reciprocal %245 {approx = true} : vector<8x8x1xf32> -> vector<8x8x1xf32>
    %247 = vector.broadcast %246 : vector<8x8x1xf32> to vector<8x8x8xf32>
    %248 = arith.mulf %243, %247 : vector<8x8x8xf32>
    %249 = arith.truncf %248 : vector<8x8x8xf32> to vector<8x8x8xbf16>
    "tpu.trace_start"() <{level = 10 : i32, message = "bqk,bkd->bqd"}> : () -> ()
    %cst_108 = arith.constant dense<0.000000e+00> : vector<8x8x8xf32>
    %250 = tpu.matmul %249, %235, %cst_108 {dimension_numbers = #tpu.dot_dimension_numbers<[2], [1], [1], [2], [0, 0, 0, 1, 1, 2], [0], [0]>} : vector<8x8x8xbf16>, vector<8x8x8xbf16>, vector<8x8x8xf32> -> vector<8x8x8xf32>
    "tpu.trace_stop"() : () -> ()
    %251 = vector.extract_strided_slice %250 {offsets = [0, 0, 0], sizes = [2, 8, 8], strides = [1, 1, 1]} : vector<8x8x8xf32> to vector<2x8x8xf32>
    %252 = vector.shape_cast %251 : vector<2x8x8xf32> to vector<16x8xf32>
    %253 = vector.extract_strided_slice %250 {offsets = [2, 0, 0], sizes = [2, 8, 8], strides = [1, 1, 1]} : vector<8x8x8xf32> to vector<2x8x8xf32>
    %254 = vector.shape_cast %253 : vector<2x8x8xf32> to vector<16x8xf32>
    %255 = vector.extract_strided_slice %250 {offsets = [4, 0, 0], sizes = [2, 8, 8], strides = [1, 1, 1]} : vector<8x8x8xf32> to vector<2x8x8xf32>
    %256 = vector.shape_cast %255 : vector<2x8x8xf32> to vector<16x8xf32>
    %257 = vector.extract_strided_slice %250 {offsets = [6, 0, 0], sizes = [2, 8, 8], strides = [1, 1, 1]} : vector<8x8x8xf32> to vector<2x8x8xf32>
    %258 = vector.shape_cast %257 : vector<2x8x8xf32> to vector<16x8xf32>
    %259 = tpu.concatenate %252, %254, %256, %258 in 1 : vector<16x8xf32>, vector<16x8xf32>, vector<16x8xf32>, vector<16x8xf32> -> vector<16x32xf32>
    %260 = arith.truncf %259 : vector<16x32xf32> to vector<16x32xbf16>
    %cst_109 = arith.constant dense<0.000000e+00> : vector<16x32xf32>
    %261 = tpu.matmul %260, %180, %cst_109 {dimension_numbers = #tpu.dot_dimension_numbers<[1], [0], [0], [1], [0, 0, 1, 1], [], []>} : vector<16x32xbf16>, vector<32x32xbf16>, vector<16x32xf32> -> vector<16x32xf32>
    %262 = vector.broadcast %182 : vector<1x32xf32> to vector<16x32xf32>
    %263 = arith.addf %261, %262 : vector<16x32xf32>
    %264 = arith.addf %174, %263 : vector<16x32xf32>
    %cst_110 = arith.constant dense<0.000000e+00> : vector<16xf32>
    %265 = vector.multi_reduction <add>, %264, %cst_110 [1] : vector<16x32xf32> to vector<16xf32>
    %266 = vector.shape_cast %265 : vector<16xf32> to vector<16x1xf32>
    %cst_111 = arith.constant 3.200000e+01 : f32
    %267 = vector.broadcast %cst_111 : f32 to vector<16x1xf32>
    %268 = arith.divf %266, %267 : vector<16x1xf32>
    %269 = vector.broadcast %268 : vector<16x1xf32> to vector<16x32xf32>
    %270 = arith.subf %264, %269 : vector<16x32xf32>
    %271 = arith.mulf %270, %270 : vector<16x32xf32>
    %cst_112 = arith.constant dense<0.000000e+00> : vector<16xf32>
    %272 = vector.multi_reduction <add>, %271, %cst_112 [1] : vector<16x32xf32> to vector<16xf32>
    %273 = vector.shape_cast %272 : vector<16xf32> to vector<16x1xf32>
    %cst_113 = arith.constant 3.200000e+01 : f32
    %274 = vector.broadcast %cst_113 : f32 to vector<16x1xf32>
    %275 = arith.divf %273, %274 : vector<16x1xf32>
    %cst_114 = arith.constant 9.99999974E-6 : f32
    %276 = vector.broadcast %cst_114 : f32 to vector<16x1xf32>
    %277 = arith.addf %275, %276 : vector<16x1xf32>
    %278 = math.rsqrt %277 : vector<16x1xf32>
    %279 = vector.broadcast %278 : vector<16x1xf32> to vector<16x32xf32>
    %280 = arith.mulf %270, %279 : vector<16x32xf32>
    %281 = vector.broadcast %184 : vector<1x32xf32> to vector<16x32xf32>
    %282 = arith.mulf %280, %281 : vector<16x32xf32>
    %283 = vector.broadcast %186 : vector<1x32xf32> to vector<16x32xf32>
    %284 = arith.addf %282, %283 : vector<16x32xf32>
    %285 = arith.truncf %284 : vector<16x32xf32> to vector<16x32xbf16>
    %cst_115 = arith.constant dense<0.000000e+00> : vector<16x64xf32>
    %286 = tpu.matmul %285, %188, %cst_115 {dimension_numbers = #tpu.dot_dimension_numbers<[1], [0], [0], [1], [0, 0, 1, 1], [], []>} : vector<16x32xbf16>, vector<32x64xbf16>, vector<16x64xf32> -> vector<16x64xf32>
    %287 = vector.broadcast %190 : vector<1x64xf32> to vector<16x64xf32>
    %288 = arith.addf %286, %287 : vector<16x64xf32>
    %289 = arith.mulf %288, %288 : vector<16x64xf32>
    %290 = arith.mulf %288, %289 : vector<16x64xf32>
    %cst_116 = arith.constant 4.471500e-02 : f32
    %291 = vector.broadcast %cst_116 : f32 to vector<16x64xf32>
    %292 = arith.mulf %291, %290 : vector<16x64xf32>
    %293 = arith.addf %288, %292 : vector<16x64xf32>
    %cst_117 = arith.constant 0.797884583 : f32
    %294 = vector.broadcast %cst_117 : f32 to vector<16x64xf32>
    %295 = arith.mulf %294, %293 : vector<16x64xf32>
    %296 = math.tanh %295 : vector<16x64xf32>
    %cst_118 = arith.constant 1.000000e+00 : f32
    %297 = vector.broadcast %cst_118 : f32 to vector<16x64xf32>
    %298 = arith.addf %297, %296 : vector<16x64xf32>
    %cst_119 = arith.constant 5.000000e-01 : f32
    %299 = vector.broadcast %cst_119 : f32 to vector<16x64xf32>
    %300 = arith.mulf %299, %298 : vector<16x64xf32>
    %301 = arith.mulf %288, %300 : vector<16x64xf32>
    %302 = arith.truncf %301 : vector<16x64xf32> to vector<16x64xbf16>
    %cst_120 = arith.constant dense<0.000000e+00> : vector<16x32xf32>
    %303 = tpu.matmul %302, %192, %cst_120 {dimension_numbers = #tpu.dot_dimension_numbers<[1], [0], [0], [1], [0, 0, 1, 1], [], []>} : vector<16x64xbf16>, vector<64x32xbf16>, vector<16x32xf32> -> vector<16x32xf32>
    %304 = vector.broadcast %194 : vector<1x32xf32> to vector<16x32xf32>
    %305 = arith.addf %303, %304 : vector<16x32xf32>
    %306 = arith.addf %284, %305 : vector<16x32xf32>
    %cst_121 = arith.constant dense<0.000000e+00> : vector<16xf32>
    %307 = vector.multi_reduction <add>, %306, %cst_121 [1] : vector<16x32xf32> to vector<16xf32>
    %308 = vector.shape_cast %307 : vector<16xf32> to vector<16x1xf32>
    %cst_122 = arith.constant 3.200000e+01 : f32
    %309 = vector.broadcast %cst_122 : f32 to vector<16x1xf32>
    %310 = arith.divf %308, %309 : vector<16x1xf32>
    %311 = vector.broadcast %310 : vector<16x1xf32> to vector<16x32xf32>
    %312 = arith.subf %306, %311 : vector<16x32xf32>
    %313 = arith.mulf %312, %312 : vector<16x32xf32>
    %cst_123 = arith.constant dense<0.000000e+00> : vector<16xf32>
    %314 = vector.multi_reduction <add>, %313, %cst_123 [1] : vector<16x32xf32> to vector<16xf32>
    %315 = vector.shape_cast %314 : vector<16xf32> to vector<16x1xf32>
    %cst_124 = arith.constant 3.200000e+01 : f32
    %316 = vector.broadcast %cst_124 : f32 to vector<16x1xf32>
    %317 = arith.divf %315, %316 : vector<16x1xf32>
    %cst_125 = arith.constant 9.99999974E-6 : f32
    %318 = vector.broadcast %cst_125 : f32 to vector<16x1xf32>
    %319 = arith.addf %317, %318 : vector<16x1xf32>
    %320 = math.rsqrt %319 : vector<16x1xf32>
    %321 = vector.broadcast %320 : vector<16x1xf32> to vector<16x32xf32>
    %322 = arith.mulf %312, %321 : vector<16x32xf32>
    %323 = vector.broadcast %196 : vector<1x32xf32> to vector<16x32xf32>
    %324 = arith.mulf %322, %323 : vector<16x32xf32>
    %325 = vector.broadcast %198 : vector<1x32xf32> to vector<16x32xf32>
    %326 = arith.addf %324, %325 : vector<16x32xf32>
    %327 = vector.extract_strided_slice %326 {offsets = [0, 0], sizes = [1, 32], strides = [1, 1]} : vector<16x32xf32> to vector<1x32xf32>
    %328 = vector.extract_strided_slice %326 {offsets = [8, 0], sizes = [1, 32], strides = [1, 1]} : vector<16x32xf32> to vector<1x32xf32>
    %329 = tpu.concatenate %327, %328 in 0 : vector<1x32xf32>, vector<1x32xf32> -> vector<2x32xf32>
    %330 = arith.truncf %329 : vector<2x32xf32> to vector<2x32xbf16>
    %c0_126 = arith.constant 0 : index
    %c0_127 = arith.constant 0 : index
    %331 = vector.load %arg15[%c0_126, %c0_127] : memref<32x32xbf16, #tpu.memory_space<vmem>>, vector<32x32xbf16>
    %cst_128 = arith.constant dense<0.000000e+00> : vector<2x32xf32>
    %332 = tpu.matmul %330, %331, %cst_128 {dimension_numbers = #tpu.dot_dimension_numbers<[1], [0], [0], [1], [0, 0, 1, 1], [], []>} : vector<2x32xbf16>, vector<32x32xbf16>, vector<2x32xf32> -> vector<2x32xf32>
    %c0_129 = arith.constant 0 : index
    %c0_130 = arith.constant 0 : index
    %333 = vector.load %arg16[%c0_129, %c0_130] : memref<1x32xf32, #tpu.memory_space<vmem>>, vector<1x32xf32>
    %334 = vector.broadcast %333 : vector<1x32xf32> to vector<2x32xf32>
    %335 = arith.addf %332, %334 : vector<2x32xf32>
    %336 = math.tanh %335 : vector<2x32xf32>
    %337 = arith.truncf %336 : vector<2x32xf32> to vector<2x32xbf16>
    %c0_131 = arith.constant 0 : index
    %c0_132 = arith.constant 0 : index
    %338 = vector.load %arg17[%c0_131, %c0_132] : memref<32x3xbf16, #tpu.memory_space<vmem>>, vector<32x3xbf16>
    %cst_133 = arith.constant dense<0.000000e+00> : vector<2x3xf32>
    %339 = tpu.matmul %337, %338, %cst_133 {dimension_numbers = #tpu.dot_dimension_numbers<[1], [0], [0], [1], [0, 0, 1, 1], [], []>} : vector<2x32xbf16>, vector<32x3xbf16>, vector<2x3xf32> -> vector<2x3xf32>
    %c0_134 = arith.constant 0 : index
    %c0_135 = arith.constant 0 : index
    %340 = vector.load %arg18[%c0_134, %c0_135] : memref<1x3xf32, #tpu.memory_space<vmem>>, vector<1x3xf32>
    %341 = vector.broadcast %340 : vector<1x3xf32> to vector<2x3xf32>
    %342 = arith.addf %339, %341 : vector<2x3xf32>
    %c0_136 = arith.constant 0 : index
    %c0_137 = arith.constant 0 : index
    %343 = vector.load %arg20[%c0_136, %c0_137] : memref<2x3xf32, #tpu.memory_space<vmem>>, vector<2x3xf32>
    tpu.vector_store %arg20[%c0_136, %c0_137], %342 {strides = array<i32>} : memref<2x3xf32, #tpu.memory_space<vmem>>, vector<2x3xf32>,
    %cst_138 = arith.constant dense<0xFF800000> : vector<2xf32>
    %344 = vector.multi_reduction <maximumf>, %342, %cst_138 [1] : vector<2x3xf32> to vector<2xf32>
    %345 = vector.shape_cast %344 : vector<2xf32> to vector<2x1xf32>
    %346 = vector.broadcast %345 : vector<2x1xf32> to vector<2x3xf32>
    %347 = arith.subf %342, %346 : vector<2x3xf32>
    %348 = math.exp %347 : vector<2x3xf32>
    %cst_139 = arith.constant dense<0.000000e+00> : vector<2xf32>
    %349 = vector.multi_reduction <add>, %348, %cst_139 [1] : vector<2x3xf32> to vector<2xf32>
    %350 = vector.shape_cast %349 : vector<2xf32> to vector<2x1xf32>
    %351 = math.log %350 : vector<2x1xf32>
    %352 = arith.addf %345, %351 : vector<2x1xf32>
    %353 = tpu.iota {dimensions = array<i32: 1>} : vector<2x3xi32>
    %354 = tpu.iota {dimensions = array<i32: 0>} : vector<2x3xi32>
    %cst_140 = arith.constant 0.000000e+00 : f32
    %355 = vector.broadcast %cst_140 : f32 to vector<2x3xf32>
    %c0_i32 = arith.constant 0 : i32
    %356 = vector.broadcast %c0_i32 : i32 to vector<2x3xi32>
    %357 = arith.cmpi eq, %354, %356 : vector<2x3xi32>
    %c0_141 = arith.constant 0 : index
    %358 = memref.load %arg19[%c0_141] : memref<2xi32, #tpu.memory_space<smem>>
    %359 = vector.broadcast %358 : i32 to vector<2x3xi32>
    %360 = arith.cmpi eq, %353, %359 : vector<2x3xi32>
    %361 = arith.andi %357, %360 : vector<2x3xi1>
    %cst_142 = arith.constant 1.000000e+00 : f32
    %cst_143 = arith.constant 0.000000e+00 : f32
    %362 = vector.broadcast %cst_142 : f32 to vector<2x3xf32>
    %363 = vector.broadcast %cst_143 : f32 to vector<2x3xf32>
    %364 = arith.select %361, %362, %363 : vector<2x3xi1>, vector<2x3xf32>
    %365 = arith.addf %355, %364 : vector<2x3xf32>
    %c1_i32 = arith.constant 1 : i32
    %366 = vector.broadcast %c1_i32 : i32 to vector<2x3xi32>
    %367 = arith.cmpi eq, %354, %366 : vector<2x3xi32>
    %c1_144 = arith.constant 1 : index
    %368 = memref.load %arg19[%c1_144] : memref<2xi32, #tpu.memory_space<smem>>
    %369 = vector.broadcast %368 : i32 to vector<2x3xi32>
    %370 = arith.cmpi eq, %353, %369 : vector<2x3xi32>
    %371 = arith.andi %367, %370 : vector<2x3xi1>
    %cst_145 = arith.constant 1.000000e+00 : f32
    %cst_146 = arith.constant 0.000000e+00 : f32
    %372 = vector.broadcast %cst_145 : f32 to vector<2x3xf32>
    %373 = vector.broadcast %cst_146 : f32 to vector<2x3xf32>
    %374 = arith.select %371, %372, %373 : vector<2x3xi1>, vector<2x3xf32>
    %375 = arith.addf %365, %374 : vector<2x3xf32>
    %376 = arith.mulf %375, %342 : vector<2x3xf32>
    %cst_147 = arith.constant dense<0.000000e+00> : vector<2xf32>
    %377 = vector.multi_reduction <add>, %376, %cst_147 [1] : vector<2x3xf32> to vector<2xf32>
    %378 = vector.shape_cast %377 : vector<2xf32> to vector<2x1xf32>
    %379 = arith.subf %352, %378 : vector<2x1xf32>
    %cst_148 = arith.constant dense<0.000000e+00> : vector<1xf32>
    %380 = vector.multi_reduction <add>, %379, %cst_148 [0] : vector<2x1xf32> to vector<1xf32>
    %381 = vector.shape_cast %380 : vector<1xf32> to vector<1x1xf32>
    %cst_149 = arith.constant 5.000000e-01 : f32
    %382 = vector.broadcast %cst_149 : f32 to vector<1x1xf32>
    %383 = arith.mulf %381, %382 : vector<1x1xf32>
    %c0_150 = arith.constant 0 : index
    %c0_151 = arith.constant 0 : index
    %384 = vector.load %arg21[%c0_150, %c0_151] : memref<1x1xf32, #tpu.memory_space<vmem>>, vector<1x1xf32>
    tpu.vector_store %arg21[%c0_150, %c0_151], %383 {strides = array<i32>} : memref<1x1xf32, #tpu.memory_space<vmem>>, vector<1x1xf32>,
    return
  }
}

</mosaic_0001>

<bundles_post_ra>
// kernel: umberto_forward.1
= control target key start
LH: loop header
LB: loop body
LE: loop exit
PB: predicated region body
PF: predicated region fallthrough
CT: control target
= control target key end

     0   :  { %s4561_s0 = inlined_call_operand.vmem [shape: f32[16,32], index: 0, kind: input, shape index: {}]   ;;  %s4562_s1 = inlined_call_operand.vmem [shape: f32[1,32], index: 1, kind: input, shape index: {}]   ;;  %s4563_s2 = inlined_call_operand.vmem [shape: f32[1,32], index: 2, kind: input, shape index: {}]   ;;  %s4564_s3 = inlined_call_operand.vmem [shape: bf16[2,32,96], index: 3, kind: input, shape index: {}]   ;;  %s4565_s4 = inlined_call_operand.vmem [shape: f32[2,1,96], index: 4, kind: input, shape index: {}]   ;;  %s4566_s5 = inlined_call_operand.vmem [shape: bf16[2,32,32], index: 5, kind: input, shape index: {}]   ;;  %s4567_s6 = inlined_call_operand.vmem [shape: f32[2,1,32], index: 6, kind: input, shape index: {}]   ;;  %s4568_s7 = inlined_call_operand.vmem [shape: f32[2,1,32], index: 7, kind: input, shape index: {}]   ;;  %s4569_s8 = inlined_call_operand.vmem [shape: f32[2,1,32], index: 8, kind: input, shape index: {}]   ;;  %s4570_s9 = inlined_call_operand.vmem [shape: bf16[2,32,64], index: 9, kind: input, shape index: {}]   ;;  %s4571_s10 = inlined_call_operand.vmem [shape: f32[2,1,64], index: 10, kind: input, shape index: {}]   ;;  %s4572_s11 = inlined_call_operand.vmem [shape: bf16[2,64,32], index: 11, kind: input, shape index: {}]   ;;  %s4573_s12 = inlined_call_operand.vmem [shape: f32[2,1,32], index: 12, kind: input, shape index: {}]   ;;  %s4574_s13 = inlined_call_operand.vmem [shape: f32[2,1,32], index: 13, kind: input, shape index: {}]   ;;  %s4575_s14 = inlined_call_operand.vmem [shape: f32[2,1,32], index: 14, kind: input, shape index: {}]   ;;  %s4576_s15 = inlined_call_operand.vmem [shape: bf16[32,32], index: 15, kind: input, shape index: {}]   ;;  %s4577_s16 = inlined_call_operand.vmem [shape: f32[1,32], index: 16, kind: input, shape index: {}]   ;;  %s4578_s17 = inlined_call_operand.vmem [shape: bf16[32,3], index: 17, kind: input, shape index: {}]   ;;  %s4579_s18 = inlined_call_operand.vmem [shape: f32[1,3], index: 18, kind: input, shape index: {}]   ;;  %s4580_s19 = inlined_call_operand.vmem [shape: s32[2], index: 19, kind: input, shape index: {}]   ;;  %s4581_s20 = inlined_call_operand.hbm [shape: f32[2,3], index: 20, kind: output, shape index: {0}]   ;;  %s4582_s21 = inlined_call_operand.hbm [shape: f32[1,1], index: 21, kind: output, shape index: {1}]  }
   0x1   :  { %4589 = sst [smem:[#allocation11_spill]] %s4561_s0 }
   0x2   :  { %4590 = sst [smem:[#allocation12_spill]] %s4562_s1 }
   0x3   :  { %4591 = sst [smem:[#allocation13_spill]] %s4563_s2 }
   0x4   :  { %4592 = sst [smem:[#allocation14_spill]] %s4564_s3 }
   0x5   :  { %4593 = sst [smem:[#allocation15_spill]] %s4565_s4 }
   0x6   :  { %4594 = sst [smem:[#allocation16_spill]] %s4566_s5 }
   0x7   :  { %27 = vsyncpa [#allocation4], 0 }
   0x8   :  { %28 = vsyncpa [#allocation3], 0 }
   0x9   :  { %29 = vsyncpa [#allocation7], 0  ;;  %s74_s26 = sshll.u32 %s4580_s19, 4  ;;  %s75_s26 = int_to_ptr.vmem [resolvable:$true] %s74_s26 }
   0xa   :  { %s3725_s27 = scalar_lea.vmem %s75_s26, 16  ;;  %p3730_p1 = scmp.lt.s32.totalorder %s75_s26, %s75_s26 }
   0xb   :  { %p3726_p0 = scmp.ne.s32.totalorder %s75_s26, %s3725_s27  ;;  %p3731_p2 = scmp.lt.s32.totalorder %s3725_s27, %s3725_s27 }
   0xd   :  { %p3732_p3 = por %p3731_p2, %p3730_p1 }
   0xf   :  { %p3733_p4 = pnand %p3732_p3, %p3726_p0 }
  0x11   :  { %3736 = shalt.err (!%p3733_p4)
}
  0x12   :  { %s3787_s3 = smov [#allocation2]  }
  0x13   :  { %77 = dma.vmem_to_smem %s75_s26, 16, %s3787_s3, [#allocation4]  }
  0x14   :  { %3781 = dma.done.wait [#allocation4], 16  }
  0x15   :  { %3782 = vsyncadd [#allocation4], 4294967280 }
  0x16   :  { %81 = sfence }
  0x17   :  { %s4595_s0 = sld [smem:[#allocation11_spill]]  ;;  %vm87_vm0 = vcmask 261120   ;;  %s4596_s22 = sld [smem:[#allocation14_spill]]  ;;  %v3788_v15 = vmov 0.0   ;;  %vm3789_vm1 = vmmov 0   ;;  %vm253_vm2 = vcmask 64512  }
  0x18   :  { %3250 = vmatprep.subr.bf16.mxu0 %v3788_v15  ;;  %3258 = vmatprep.subr.bf16.mxu1 %v3788_v15  ;;  %s4597_s25 = sld [smem:[#allocation12_spill]]  ;;  %s4598_s3 = sld [smem:[#allocation13_spill]]  ;;  %vm752_vm3 = vcmask 1043456   ;;  %vm1158_vm4 = vcmask 130048   ;;  %vm1161_vm5 = vcmask 195584   ;;  %vm1383_vm6 = vcmask 523264  }
  0x19   :  { %3254 = vmatprep.mubr.msk.bf16.mxu0 %vm3789_vm1, %v3788_v15  ;;  %3260 = vmatprep.mubr.msk.bf16.mxu1 %vm3789_vm1, %v3788_v15  ;;  %s3790_s4 = smov 112   ;;  %s3791_s19 = smov 120   ;;  %vm2823_vm7 = vcmask 1040384   ;;  %vm2960_vm14 = vcmask 17408  }
  0x1a   :  { %s3792_s30 = smov 104   ;;  %s3793_s5 = smov 96  }
  0x1b   :  { %s3794_s23 = smov 64   ;;  %s3795_s1 = smov 8  }
  0x1c   :  { %s4587_s28 = smov 24   ;;  %s2979_s26 = sld [smem:[#allocation2]] }
  0x1d   :  { %v83_v0 = vld [vmem:[%s4595_s0] sm:$0xff]  ;;  %v84_v1 = vld [vmem:[%s4595_s0 + $0x8] sm:$0xff]  ;;  %s4599_s0 = sld [smem:[#allocation15_spill]]  ;;  %s3151_s27 = sld [smem:[#allocation2 + $0x1]] }
  0x1e   :  { %v88_v2 = vsel %vm87_vm0, %v83_v0, 0.0  ;;  %v91_v3 = vsel %vm87_vm0, %v84_v1, 0.0  ;;  %v3603_v14 = vld [vmem:[%s4596_s22] sm:$0xff]   ;;  %v3604_v16 = vld [vmem:[%s4596_s22 + $0x8] sm:$0xff]  }
  0x1f   :  { %89 = vadd.xlane.f32.xlu0 %v88_v2  ;;  %3251 = vmatpush3.bf16.msra.mxu0 %v3603_v14  ;;  %v3037_v25 = vld [vmem:[%s4597_s25] ss:$0 sm:$0xff]  ;;  %s4600_s25 = sld [smem:[#allocation16_spill]] }
  0x20   :  { %3252 = vmatprep.subr.bf16.mxu0 %v3788_v15  ;;  %v3038_v29 = vld [vmem:[%s4598_s3] ss:$0 sm:$0xff]  ;;  %s4588_s3 = smov 16  }
  0x23   :  { %92 = vadd.xlane.f32.xlu0 %v91_v3  ;;  %3253 = vmatpush3.bf16.msra.mxu0 %v3604_v16  ;;  %v3039_v34 = vld [vmem:[%s4599_s0] ss:$0 sm:$0xff] }
  0x24   :  { %3264 = vmatprep.subr.bf16.mxu0 %v3788_v15 }
  0xac   :  { %v90_v4 = vpop.xlane.xlu0 %89 }
  0xad   :  { %v95_v5 = vmul.f32 0.03125, %v90_v4 }
  0xaf   :  { %v97_v6 = vsub.f32 %v83_v0, %v95_v5 }
  0xb0   :  { %v93_v7 = vpop.xlane.xlu0 %92 }
  0xb1   :  { %v96_v8 = vmul.f32 0.03125, %v93_v7  ;;  %v99_v9 = vmul.f32 %v97_v6, %v97_v6 }
  0xb3   :  { %v98_v10 = vsub.f32 %v84_v1, %v96_v8  ;;  %v101_v11 = vsel %vm87_vm0, %v99_v9, 0.0 }
  0xb4   :  { %102 = vadd.xlane.f32.xlu1 %v101_v11 }
  0xb5   :  { %v100_v12 = vmul.f32 %v98_v10, %v98_v10 }
  0xb7   :  { %v104_v13 = vsel %vm87_vm0, %v100_v12, 0.0 }
  0xb8   :  { %105 = vadd.xlane.f32.xlu1 %v104_v13 }
 0x141   :  { %v103_v17 = vpop.xlane.xlu1 %102 }
 0x142   :  { %v107_v18 = vmul.f32 0.03125, %v103_v17 }
 0x144   :  { %v109_v19 = vadd.f32 1e-05, %v107_v18 }
 0x145   :  { %v106_v20 = vpop.xlane.xlu1 %105 }
 0x146   :  { %3627 = vrsqrt.f32 %v109_v19  ;;  %v108_v21 = vmul.f32 0.03125, %v106_v20 }
 0x148   :  { %v110_v22 = vadd.f32 1e-05, %v108_v21 }
 0x14a   :  { %3629 = vrsqrt.f32 %v110_v22 }
 0x150   :  { %v3628_v23 = vpop.eup %3627 }
 0x151   :  { %v113_v24 = vmul.f32 %v3628_v23, %v97_v6 }
 0x153   :  { %v121_v28 = vmul.f32 %v3037_v25, %v113_v24 }
 0x154   :  { %v3630_v26 = vpop.eup %3629 }
 0x155   :  { %v114_v27 = vmul.f32 %v3630_v26, %v98_v10  ;;  %v3943_v31 = vadd.f32 %v3038_v29, %v121_v28 }
 0x157   :  { %v122_v30 = vmul.f32 %v3037_v25, %v114_v27 }
 0x159   :  { %v3945_v32 = vadd.f32 %v3038_v29, %v122_v30 }
 0x15b   :  { %v159_v33 = vpack.c.bf16 %v3945_v32, %v3943_v31 }
 0x15d   :  { %3255 = vmatmul.mubr.msk.bf16.vlgmr.msra.gmra.mrb[0].mxu0 %vm87_vm0, %v159_v33 }
 0x15e   :  { %3266 = vmatprep.mubr.msk.bf16.mxu0 %vm3789_vm1, %v3788_v15 }
 0x230   :  { %v215_v35 = vpop.f32.mrb[0].mxu0 }
 0x231   :  { %v3256_v36 = vpop.f32.mrb[1].mxu0  ;;  %v216_v38 = vadd.f32 %v3039_v34, %v215_v35 }
 0x232   :  { %v218_v37 = vpop.f32.mrb[2].mxu0 }
 0x233   :  { %v219_v39 = vadd.f32 %v3039_v34, %v218_v37  ;;  %v3257_v40 = vpop.f32.mrb[3].mxu0  ;;  %v242_v43 = vpack.c.bf16 %v216_v38, %v216_v38 }
 0x235   :  { %v3548_v41 = vpack.i.bf16 %v219_v39, %v216_v38  ;;  %v3957_v42 = vpack.c.bf16 %v219_v39, %v219_v39 }
 0x237   :  { %3549 = vrot.lane.b32.xlu1 %v3548_v41, %s3790_s4  ;;  %3544 = vrot.lane.b32.xlu0 %v3548_v41, %s3791_s19 }
 0x23b   :  { %3554 = vrot.lane.b32.xlu1 %v3548_v41, %s3792_s30  ;;  %301 = vrot.lane.b32.xlu0 %v3957_v42, %s3793_s5 }
 0x23f   :  { %251 = vrot.lane.b32.xlu1 %v242_v43, %s3793_s5 }
 0x2a9   :  { %v3550_v44 = vpop.permute.xlu1 %3549  ;;  %v3545_v45 = vpop.permute.xlu0 %3544 }
 0x2aa   :  { %v3547_v46 = vunpack.i.h.bf16 %v3545_v45  ;;  %v3546_v47 = vunpack.i.l.bf16 %v3545_v45  ;;  %v3552_v48 = vunpack.i.h.bf16 %v3550_v44  ;;  %v3551_v49 = vunpack.i.l.bf16 %v3550_v44 }
 0x2ac   :  { %v3963_v50 = vpack.c.bf16 %v3547_v46, %v3547_v46  ;;  %v3965_v51 = vpack.c.bf16 %v3546_v47, %v3546_v47  ;;  %v3972_v55 = vpack.c.bf16 %v3552_v48, %v3552_v48  ;;  %v3974_v56 = vpack.c.bf16 %v3551_v49, %v3551_v49 }
 0x2ad   :  { %v3555_v52 = vpop.permute.xlu1 %3554  ;;  %v302_v53 = vpop.permute.xlu0 %301 }
 0x2ae   :  { %v307_v54 = vsel %vm253_vm2, %v302_v53, 0  ;;  %350 = vrot.lane.b32.xlu1 %v3965_v51, %s3793_s5  ;;  %399 = vrot.lane.b32.xlu0 %v3963_v50, %s3793_s5  ;;  %v3557_v57 = vunpack.i.h.bf16 %v3555_v52  ;;  %v3556_v58 = vunpack.i.l.bf16 %v3555_v52 }
 0x2af   :  { %3265 = vmatpush3.bf16.xpose.msra.mxu0 %v307_v54 }
 0x2b0   :  { %3276 = vmatprep.subr.bf16.mxu0 %v3788_v15  ;;  %v3982_v61 = vpack.c.bf16 %v3557_v57, %v3557_v57  ;;  %v3984_v62 = vpack.c.bf16 %v3556_v58, %v3556_v58 }
 0x2b1   :  { %v252_v59 = vpop.permute.xlu1 %251 }
 0x2b2   :  { %448 = vrot.lane.b32.xlu1 %v3974_v56, %s3793_s5  ;;  %497 = vrot.lane.b32.xlu0 %v3972_v55, %s3793_s5  ;;  %v258_v60 = vsel %vm253_vm2, %v252_v59, 0 }
 0x2b3   :  { %3259 = vmatpush3.bf16.xpose.msra.mxu1 %v258_v60 }
 0x2b4   :  { %3270 = vmatprep.subr.bf16.mxu1 %v3788_v15 }
 0x2b6   :  { %546 = vrot.lane.b32.xlu1 %v3984_v62, %s3793_s5  ;;  %595 = vrot.lane.b32.xlu0 %v3982_v61, %s3793_s5 }
 0x2b7   :  { %3267 = vmatmul.mubr.msk.bf16.vlgmr.msra.gmra.mrb[4].mxu0 %vm253_vm2, %v3957_v42 }
 0x2b8   :  { %3278 = vmatprep.mubr.msk.bf16.mxu0 %vm3789_vm1, %v3788_v15 }
 0x2ba   :  { %3261 = vmatmul.mubr.msk.bf16.vlgmr.msra.gmra.mrb[0].mxu1 %vm253_vm2, %v242_v43  ;;  %747 = vrot.lane.b32.xlu1 %v242_v43, %s3794_s23 }
 0x2bb   :  { %3272 = vmatprep.mubr.msk.bf16.mxu1 %vm3789_vm1, %v3788_v15 }
 0x320   :  { %v351_v63 = vpop.permute.xlu1 %350  ;;  %v400_v0 = vpop.permute.xlu0 %399 }
 0x321   :  { %v356_v1 = vsel %vm253_vm2, %v351_v63, 0  ;;  %v405_v2 = vsel %vm253_vm2, %v400_v0, 0 }
 0x322   :  { %3271 = vmatpush3.bf16.xpose.msra.mxu1 %v356_v1  ;;  %3277 = vmatpush3.bf16.xpose.msra.mxu0 %v405_v2 }
 0x323   :  { %3282 = vmatprep.subr.bf16.mxu1 %v3788_v15  ;;  %3288 = vmatprep.subr.bf16.mxu0 %v3788_v15 }
 0x324   :  { %v449_v3 = vpop.permute.xlu1 %448  ;;  %v498_v4 = vpop.permute.xlu0 %497 }
 0x325   :  { %v454_v5 = vsel %vm253_vm2, %v449_v3, 0  ;;  %v503_v6 = vsel %vm253_vm2, %v498_v4, 0 }
 0x328   :  { %v547_v7 = vpop.permute.xlu1 %546  ;;  %v596_v8 = vpop.permute.xlu0 %595 }
 0x329   :  { %3273 = vmatmul.mubr.msk.bf16.vlgmr.msra.gmra.mrb[4].mxu1 %vm253_vm2, %v3965_v51  ;;  %3279 = vmatmul.mubr.msk.bf16.vlgmr.msra.gmra.mrb[8].mxu0 %vm253_vm2, %v3963_v50  ;;  %v552_v9 = vsel %vm253_vm2, %v547_v7, 0  ;;  %v601_v10 = vsel %vm253_vm2, %v596_v8, 0 }
 0x32a   :  { %3283 = vmatpush3.bf16.xpose.msra.mxu1 %v454_v5  ;;  %3289 = vmatpush3.bf16.xpose.msra.mxu0 %v503_v6 }
 0x32b   :  { %3284 = vmatprep.mubr.msk.bf16.mxu1 %vm3789_vm1, %v3788_v15  ;;  %3290 = vmatprep.mubr.msk.bf16.mxu0 %vm3789_vm1, %v3788_v15 }
 0x32c   :  { %3294 = vmatprep.subr.bf16.mxu1 %v3788_v15  ;;  %3300 = vmatprep.subr.bf16.mxu0 %v3788_v15  ;;  %v748_v11 = vpop.permute.xlu1 %747 }
 0x32d   :  { %v754_v12 = vsel %vm752_vm3, %v748_v11, 0 }
 0x331   :  { %3285 = vmatmul.mubr.msk.bf16.vlgmr.msra.gmra.mrb[8].mxu1 %vm253_vm2, %v3974_v56  ;;  %3291 = vmatmul.mubr.msk.bf16.vlgmr.msra.gmra.mrb[12].mxu0 %vm253_vm2, %v3972_v55 }
 0x332   :  { %3295 = vmatpush3.bf16.xpose.msra.mxu1 %v552_v9  ;;  %3301 = vmatpush3.bf16.xpose.msra.mxu0 %v601_v10 }
 0x333   :  { %3296 = vmatprep.mubr.msk.bf16.mxu1 %vm3789_vm1, %v3788_v15  ;;  %3302 = vmatprep.mubr.msk.bf16.mxu0 %vm3789_vm1, %v3788_v15 }
 0x334   :  { %3306 = vmatprep.subr.bf16.mxu1 %v3788_v15  ;;  %3312 = vmatprep.subr.bf16.mxu0 %v3788_v15 }
 0x339   :  { %3297 = vmatmul.mubr.msk.bf16.vlgmr.msra.gmra.mrb[12].mxu1 %vm253_vm2, %v3984_v62  ;;  %3303 = vmatmul.mubr.msk.bf16.vlgmr.msra.gmra.mrb[16].mxu0 %vm253_vm2, %v3982_v61 }
 0x33a   :  { %3307 = vmatpush3.bf16.msra.mxu1 %v754_v12  ;;  %3314 = vmatprep.mubr.msk.bf16.mxu0 %vm3789_vm1, %v3788_v15 }
 0x33b   :  { %3308 = vmatprep.mubr.msk.bf16.mxu1 %vm3789_vm1, %v3788_v15  ;;  %3318 = vmatprep.subr.bf16.mxu1 %v3788_v15 }
 0x38a   :  { %v343_v13 = vpop.f32.mrb[4].mxu0 }
 0x38b   :  { %v644_v14 = vmul.f32 0.35355338, %v343_v13  ;;  %v3268_v16 = vpop.f32.mrb[5].mxu0 }
 0x38c   :  { %v346_v17 = vpop.f32.mrb[6].mxu0 }
 0x38d   :  { %v3269_v18 = vpop.f32.mrb[7].mxu0  ;;  %v294_v19 = vpop.f32.mrb[0].mxu1  ;;  %v654_v20 = vsel %vm253_vm2, %v644_v14, -inf }
 0x38e   :  { %v643_v21 = vmul.f32 0.35355338, %v294_v19  ;;  %655 = vmax.xlane.f32.xlu0 %v654_v20  ;;  %v3262_v22 = vpop.f32.mrb[1].mxu1 }
 0x38f   :  { %v297_v23 = vpop.f32.mrb[2].mxu1 }
 0x390   :  { %v3263_v24 = vpop.f32.mrb[3].mxu1  ;;  %v651_v25 = vsel %vm253_vm2, %v643_v21, -inf }
 0x391   :  { %652 = vmax.xlane.f32.xlu1 %v651_v25 }
 0x3fc   :  { %v392_v26 = vpop.f32.mrb[4].mxu1  ;;  %v441_v27 = vpop.f32.mrb[8].mxu0 }
 0x3fd   :  { %v645_v28 = vmul.f32 0.35355338, %v392_v26  ;;  %v3274_v29 = vpop.f32.mrb[5].mxu1  ;;  %v3280_v30 = vpop.f32.mrb[9].mxu0  ;;  %v646_v35 = vmul.f32 0.35355338, %v441_v27 }
 0x3fe   :  { %v395_v33 = vpop.f32.mrb[6].mxu1  ;;  %v444_v34 = vpop.f32.mrb[10].mxu0 }
 0x3ff   :  { %v3275_v36 = vpop.f32.mrb[7].mxu1  ;;  %v3281_v37 = vpop.f32.mrb[11].mxu0  ;;  %v657_v38 = vsel %vm253_vm2, %v645_v28, -inf  ;;  %v660_v39 = vsel %vm253_vm2, %v646_v35, -inf }
 0x400   :  { %658 = vmax.xlane.f32.xlu0 %v657_v38 }
 0x404   :  { %v490_v40 = vpop.f32.mrb[8].mxu1  ;;  %661 = vmax.xlane.f32.xlu0 %v660_v39  ;;  %v539_v41 = vpop.f32.mrb[12].mxu0 }
 0x405   :  { %v647_v43 = vmul.f32 0.35355338, %v490_v40  ;;  %v4041_v44 = vmul.f32 0.35355338, %v539_v41  ;;  %v3286_v45 = vpop.f32.mrb[9].mxu1  ;;  %v3292_v46 = vpop.f32.mrb[13].mxu0 }
 0x406   :  { %v493_v47 = vpop.f32.mrb[10].mxu1  ;;  %v542_v48 = vpop.f32.mrb[14].mxu0 }
 0x407   :  { %v3287_v49 = vpop.f32.mrb[11].mxu1  ;;  %v3293_v52 = vpop.f32.mrb[15].mxu0  ;;  %v663_v53 = vsel %vm253_vm2, %v647_v43, -inf  ;;  %v666_v54 = vsel %vm253_vm2, %v4041_v44, -inf }
 0x408   :  { %664 = vmax.xlane.f32.xlu1 %v663_v53  ;;  %667 = vmax.xlane.f32.xlu0 %v666_v54 }
 0x40c   :  { %v588_v57 = vpop.f32.mrb[12].mxu1  ;;  %v637_v58 = vpop.f32.mrb[16].mxu0 }
 0x40d   :  { %v649_v59 = vmul.f32 0.35355338, %v588_v57  ;;  %v4046_v60 = vmul.f32 0.35355338, %v637_v58  ;;  %v3298_v63 = vpop.f32.mrb[13].mxu1  ;;  %v3304_v0 = vpop.f32.mrb[17].mxu0 }
 0x40e   :  { %v591_v1 = vpop.f32.mrb[14].mxu1  ;;  %v640_v2 = vpop.f32.mrb[18].mxu0 }
 0x40f   :  { %v3299_v3 = vpop.f32.mrb[15].mxu1  ;;  %v3305_v4 = vpop.f32.mrb[19].mxu0  ;;  %v669_v5 = vsel %vm253_vm2, %v649_v59, -inf  ;;  %v672_v6 = vsel %vm253_vm2, %v4046_v60, -inf }
 0x410   :  { %670 = vmax.xlane.f32.xlu1 %v669_v5  ;;  %673 = vmax.xlane.f32.xlu0 %v672_v6 }
 0x41b   :  { %v656_v7 = vpop.xlane.xlu0 %655 }
 0x41c   :  { %v676_v8 = vsub.f32 %v644_v14, %v656_v7 }
 0x41e   :  { %v653_v9 = vpop.xlane.xlu1 %652  ;;  %v685_v10 = vmul.f32 1.442695, %v676_v8 }
 0x41f   :  { %v675_v11 = vsub.f32 %v643_v21, %v653_v9 }
 0x420   :  { %3631 = vpow2.f32 %v685_v10 }
 0x421   :  { %844 = vrot.lane.b32.xlu1 %v3965_v51, %s3794_s23  ;;  %v683_v12 = vmul.f32 1.442695, %v675_v11 }
 0x423   :  { %3633 = vpow2.f32 %v683_v12 }
 0x425   :  { %892 = vrot.lane.b32.xlu1 %v3963_v50, %s3794_s23 }
 0x426   :  { %796 = vrot.lane.b32.xlu0 %v3957_v42, %s3794_s23 }
 0x42a   :  { %v3632_v13 = vpop.eup %3631 }
 0x42b   :  { %v702_v16 = vsel %vm253_vm2, %v3632_v13, 0.0 }
 0x42d   :  { %v4058_v17 = vpop.eup %3633 }
 0x42e   :  { %v699_v50 = vsel %vm253_vm2, %v4058_v17, 0.0 }
 0x445   :  { %703 = vadd.xlane.f32.xlu0 %v702_v16 }
 0x449   :  { %700 = vadd.xlane.f32.xlu1 %v699_v50 }
 0x45a   :  { %940 = vrot.lane.b32.xlu1 %v3974_v56, %s3794_s23 }
 0x48d   :  { %v659_v42 = vpop.xlane.xlu0 %658 }
 0x48e   :  { %v677_v51 = vsub.f32 %v645_v28, %v659_v42 }
 0x490   :  { %v687_v14 = vmul.f32 1.442695, %v677_v51 }
 0x491   :  { %v662_v18 = vpop.xlane.xlu0 %661 }
 0x492   :  { %3635 = vpow2.f32 %v687_v14  ;;  %v678_v19 = vsub.f32 %v646_v35, %v662_v18 }
 0x494   :  { %v689_v20 = vmul.f32 1.442695, %v678_v19 }
 0x495   :  { %v665_v21 = vpop.xlane.xlu1 %664  ;;  %v668_v24 = vpop.xlane.xlu0 %667 }
 0x496   :  { %3637 = vpow2.f32 %v689_v20  ;;  %v679_v22 = vsub.f32 %v647_v43, %v665_v21  ;;  %v680_v40 = vsub.f32 %v4041_v44, %v668_v24 }
 0x498   :  { %v691_v23 = vmul.f32 1.442695, %v679_v22  ;;  %v693_v41 = vmul.f32 1.442695, %v680_v40 }
 0x49a   :  { %3639 = vpow2.f32 %v691_v23 }
 0x49c   :  { %v4064_v25 = vpop.eup %3635 }
 0x49d   :  { %v671_v26 = vpop.xlane.xlu1 %670  ;;  %v674_v27 = vpop.xlane.xlu0 %673  ;;  %v705_v56 = vsel %vm253_vm2, %v4064_v25, 0.0 }
 0x49e   :  { %v681_v29 = vsub.f32 %v649_v59, %v671_v26  ;;  %706 = vadd.xlane.f32.xlu1 %v705_v56  ;;  %v682_v43 = vsub.f32 %v4046_v60, %v674_v27 }
 0x4a0   :  { %v4068_v28 = vpop.eup %3637  ;;  %v695_v30 = vmul.f32 1.442695, %v681_v29  ;;  %v697_v45 = vmul.f32 1.442695, %v682_v43 }
 0x4a1   :  { %v797_v33 = vpop.permute.xlu0 %796  ;;  %v708_v34 = vsel %vm253_vm2, %v4068_v28, 0.0  ;;  %v845_v46 = vpop.permute.xlu1 %844 }
 0x4a2   :  { %3641 = vpow2.f32 %v695_v30  ;;  %v802_v35 = vsel %vm752_vm3, %v797_v33, 0  ;;  %709 = vadd.xlane.f32.xlu0 %v708_v34  ;;  %v850_v0 = vsel %vm752_vm3, %v845_v46, 0 }
 0x4a3   :  { %3313 = vmatpush3.bf16.msra.mxu0 %v802_v35  ;;  %3643 = vpow2.f32 %v693_v41 }
 0x4a4   :  { %v4073_v36 = vpop.eup %3639  ;;  %3324 = vmatprep.subr.bf16.mxu0 %v3788_v15  ;;  %3645 = vpow2.f32 %v697_v45 }
 0x4a5   :  { %v711_v37 = vsel %vm253_vm2, %v4073_v36, 0.0  ;;  %v893_v47 = vpop.permute.xlu1 %892 }
 0x4a6   :  { %712 = vadd.xlane.f32.xlu1 %v711_v37  ;;  %v898_v59 = vsel %vm752_vm3, %v893_v47, 0 }
 0x4ac   :  { %v4078_v38 = vpop.eup %3641 }
 0x4ad   :  { %v717_v39 = vsel %vm253_vm2, %v4078_v38, 0.0  ;;  %v4088_v49 = vpop.eup %3643 }
 0x4ae   :  { %718 = vadd.xlane.f32.xlu1 %v717_v39  ;;  %v4092_v53 = vpop.eup %3645 }
 0x4b8   :  { %988 = vrot.lane.b32.xlu0 %v3972_v55, %s3794_s23  ;;  %v714_v55 = vsel %vm253_vm2, %v4088_v49, 0.0 }
 0x4bf   :  { %1036 = vrot.lane.b32.xlu1 %v3984_v62, %s3794_s23  ;;  %v720_v62 = vsel %vm253_vm2, %v4092_v53, 0.0 }
 0x4d2   :  { %v704_v48 = vpop.xlane.xlu0 %703 }
 0x4d3   :  { %3647 = vrcp.f32 %v704_v48 }
 0x4d6   :  { %v701_v52 = vpop.xlane.xlu1 %700 }
 0x4d7   :  { %3649 = vrcp.f32 %v701_v52  ;;  %715 = vadd.xlane.f32.xlu0 %v714_v55 }
 0x4da   :  { %v941_v1 = vpop.permute.xlu1 %940 }
 0x4db   :  { %721 = vadd.xlane.f32.xlu0 %v720_v62  ;;  %v946_v9 = vsel %vm752_vm3, %v941_v1, 0 }
 0x4dd   :  { %v3648_v44 = vpop.eup %3647 }
 0x4de   :  { %v732_v54 = vmul.f32 %v3648_v44, %v3632_v13 }
 0x4e0   :  { %v740_v57 = vpack.c.bf16 %v732_v54, %v732_v54 }
 0x4e1   :  { %v3650_v58 = vpop.eup %3649 }
 0x4e2   :  { %v731_v60 = vmul.f32 %v3650_v58, %v4058_v17  ;;  %3315 = vmatmul.mubr.msk.bf16.vlgmr.msra.gmra.mrb[20].mxu0 %vm253_vm2, %v740_v57 }
 0x4e3   :  { %3325 = vmatpush3.bf16.msra.mxu0 %v898_v59  ;;  %3326 = vmatprep.mubr.msk.bf16.mxu0 %vm3789_vm1, %v3788_v15  ;;  %v3605_v59 = vld [vmem:[%s4600_s25] sm:$0xff]  }
 0x4e4   :  { %v739_v63 = vpack.c.bf16 %v731_v60, %v731_v60  ;;  %3336 = vmatprep.subr.bf16.mxu0 %v3788_v15  ;;  %v3606_v60 = vld [vmem:[%s4600_s25 + $0x8] sm:$0xff]  }
 0x4e6   :  { %3309 = vmatmul.mubr.msk.bf16.vlgmr.msra.gmra.mrb[16].mxu1 %vm253_vm2, %v739_v63 }
 0x4e7   :  { %3319 = vmatpush3.bf16.msra.mxu1 %v850_v0  ;;  %3320 = vmatprep.mubr.msk.bf16.mxu1 %vm3789_vm1, %v3788_v15 }
 0x4e8   :  { %3330 = vmatprep.subr.bf16.mxu1 %v3788_v15 }
 0x4f1   :  { %1084 = vrot.lane.b32.xlu0 %v3982_v61, %s3794_s23 }
 0x52b   :  { %v707_v2 = vpop.xlane.xlu1 %706 }
 0x52c   :  { %3651 = vrcp.f32 %v707_v2 }
 0x52f   :  { %v710_v3 = vpop.xlane.xlu0 %709 }
 0x530   :  { %3653 = vrcp.f32 %v710_v3 }
 0x533   :  { %v713_v4 = vpop.xlane.xlu1 %712  ;;  %v989_v61 = vpop.permute.xlu0 %988 }
 0x534   :  { %3655 = vrcp.f32 %v713_v4  ;;  %v994_v17 = vsel %vm752_vm3, %v989_v61, 0 }
 0x536   :  { %v3652_v5 = vpop.eup %3651 }
 0x537   :  { %v733_v6 = vmul.f32 %v3652_v5, %v4064_v25 }
 0x539   :  { %v741_v7 = vpack.c.bf16 %v733_v6, %v733_v6 }
 0x53a   :  { %v3654_v8 = vpop.eup %3653 }
 0x53b   :  { %v734_v10 = vmul.f32 %v3654_v8, %v4068_v28  ;;  %3321 = vmatmul.mubr.msk.bf16.vlgmr.msra.gmra.mrb[20].mxu1 %vm253_vm2, %v741_v7  ;;  %v719_v11 = vpop.xlane.xlu1 %718 }
 0x53c   :  { %3331 = vmatpush3.bf16.msra.mxu1 %v946_v9  ;;  %3657 = vrcp.f32 %v719_v11  ;;  %3332 = vmatprep.mubr.msk.bf16.mxu1 %vm3789_vm1, %v3788_v15 }
 0x53d   :  { %v742_v12 = vpack.c.bf16 %v734_v10, %v734_v10  ;;  %3342 = vmatprep.subr.bf16.mxu1 %v3788_v15 }
 0x53e   :  { %v3656_v13 = vpop.eup %3655 }
 0x53f   :  { %v735_v16 = vmul.f32 %v3656_v13, %v4073_v36  ;;  %3327 = vmatmul.mubr.msk.bf16.vlgmr.msra.gmra.mrb[24].mxu0 %vm253_vm2, %v742_v12  ;;  %v1037_v50 = vpop.permute.xlu1 %1036 }
 0x540   :  { %3337 = vmatpush3.bf16.msra.mxu0 %v994_v17  ;;  %3338 = vmatprep.mubr.msk.bf16.mxu0 %vm3789_vm1, %v3788_v15  ;;  %v1042_v51 = vsel %vm752_vm3, %v1037_v50, 0 }
 0x541   :  { %v743_v42 = vpack.c.bf16 %v735_v16, %v735_v16  ;;  %3348 = vmatprep.subr.bf16.mxu0 %v3788_v15 }
 0x543   :  { %3333 = vmatmul.mubr.msk.bf16.vlgmr.msra.gmra.mrb[24].mxu1 %vm253_vm2, %v743_v42 }
 0x544   :  { %3343 = vmatpush3.bf16.msra.mxu1 %v1042_v51  ;;  %3344 = vmatprep.mubr.msk.bf16.mxu1 %vm3789_vm1, %v3788_v15 }
 0x545   :  { %3354 = vmatprep.subr.bf16.mxu1 %v3788_v15 }
 0x546   :  { %v3658_v14 = vpop.eup %3657 }
 0x547   :  { %v737_v18 = vmul.f32 %v3658_v14, %v4078_v38 }
 0x549   :  { %v745_v19 = vpack.c.bf16 %v737_v18, %v737_v18 }
 0x54b   :  { %3345 = vmatmul.mubr.msk.bf16.vlgmr.msra.gmra.mrb[28].mxu1 %vm253_vm2, %v745_v19 }
 0x54c   :  { %3358 = vmatprep.mubr.msk.bf16.mxu1 %vm3789_vm1, %v3788_v15  ;;  %3355 = vmatpush3.bf16.msra.mxu1 %v3605_v59  ;;  %v3064_v59 = vld [vmem:[%s4569_s8] ss:$0 sm:$0xff] }
 0x54d   :  { %3356 = vmatprep.subr.bf16.mxu1 %v3788_v15 }
 0x550   :  { %3357 = vmatpush3.bf16.msra.mxu1 %v3606_v60 }
 0x551   :  { %3370 = vmatprep.subr.bf16.mxu1 %v3788_v15 }
 0x564   :  { %v716_v20 = vpop.xlane.xlu0 %715 }
 0x565   :  { %3659 = vrcp.f32 %v716_v20 }
 0x568   :  { %v722_v21 = vpop.xlane.xlu0 %721 }
 0x569   :  { %3661 = vrcp.f32 %v722_v21 }
 0x56c   :  { %v1085_v24 = vpop.permute.xlu0 %1084 }
 0x56d   :  { %v1090_v27 = vsel %vm752_vm3, %v1085_v24, 0 }
 0x56f   :  { %v3660_v22 = vpop.eup %3659 }
 0x570   :  { %v736_v23 = vmul.f32 %v3660_v22, %v4088_v49  ;;  %v3059_v22 = vld [vmem:[%s4567_s6] ss:$0 sm:$0xff] }
 0x572   :  { %v744_v25 = vpack.c.bf16 %v736_v23, %v736_v23 }
 0x573   :  { %v3662_v26 = vpop.eup %3661 }
 0x574   :  { %3339 = vmatmul.mubr.msk.bf16.vlgmr.msra.gmra.mrb[28].mxu0 %vm253_vm2, %v744_v25  ;;  %v738_v56 = vmul.f32 %v3662_v26, %v4092_v53 }
 0x575   :  { %3349 = vmatpush3.bf16.msra.mxu0 %v1090_v27  ;;  %3350 = vmatprep.mubr.msk.bf16.mxu0 %vm3789_vm1, %v3788_v15 }
 0x576   :  { %3362 = vmatprep.subr.bf16.mxu0 %v3788_v15  ;;  %v746_v29 = vpack.c.bf16 %v738_v56, %v738_v56 }
 0x57c   :  { %3351 = vmatmul.mubr.msk.bf16.vlgmr.msra.gmra.mrb[32].mxu0 %vm253_vm2, %v746_v29 }
 0x57d   :  { %3366 = vmatprep.mubr.msk.bf16.mxu0 %vm3789_vm1, %v3788_v15 }
 0x5b5   :  { %v838_v28 = vpop.f32.mrb[20].mxu0 }
 0x5b6   :  { %v3316_v30 = vpop.f32.mrb[21].mxu0 }
 0x5b7   :  { %v841_v33 = vpop.f32.mrb[22].mxu0 }
 0x5b8   :  { %v3317_v34 = vpop.f32.mrb[23].mxu0 }
 0x5b9   :  { %v790_v35 = vpop.f32.mrb[16].mxu1 }
 0x5ba   :  { %v3310_v36 = vpop.f32.mrb[17].mxu1 }
 0x5bb   :  { %v793_v37 = vpop.f32.mrb[18].mxu1 }
 0x5bc   :  { %v3311_v38 = vpop.f32.mrb[19].mxu1 }
 0x60e   :  { %v886_v39 = vpop.f32.mrb[20].mxu1 }
 0x60f   :  { %v3322_v40 = vpop.f32.mrb[21].mxu1 }
 0x610   :  { %v889_v41 = vpop.f32.mrb[22].mxu1 }
 0x611   :  { %v3323_v43 = vpop.f32.mrb[23].mxu1 }
 0x612   :  { %v934_v45 = vpop.f32.mrb[24].mxu0 }
 0x613   :  { %v3558_v46 = vpack.i.bf16 %v934_v45, %v886_v39  ;;  %v3328_v47 = vpop.f32.mrb[25].mxu0  ;;  %v3608_v45 = vld [vmem:[%s4570_s9 + $0x8] sm:$0xff]  }
 0x614   :  { %v937_v48 = vpop.f32.mrb[26].mxu0 }
 0x615   :  { %3559 = vrot.lane.b32.xlu1 %v3558_v46, %s3795_s1  ;;  %v3329_v49 = vpop.f32.mrb[27].mxu0 }
 0x616   :  { %v982_v52 = vpop.f32.mrb[24].mxu1 }
 0x617   :  { %v3334_v55 = vpop.f32.mrb[25].mxu1 }
 0x618   :  { %v985_v53 = vpop.f32.mrb[26].mxu1 }
 0x619   :  { %v3335_v62 = vpop.f32.mrb[27].mxu1 }
 0x61e   :  { %v1078_v44 = vpop.f32.mrb[28].mxu1 }
 0x61f   :  { %v3346_v54 = vpop.f32.mrb[29].mxu1 }
 0x620   :  { %v1081_v57 = vpop.f32.mrb[30].mxu1 }
 0x621   :  { %v3347_v58 = vpop.f32.mrb[31].mxu1 }
 0x647   :  { %v1030_v63 = vpop.f32.mrb[28].mxu0 }
 0x648   :  { %v3563_v0 = vpack.i.bf16 %v1030_v63, %v982_v52  ;;  %v3340_v1 = vpop.f32.mrb[29].mxu0 }
 0x649   :  { %v1033_v2 = vpop.f32.mrb[30].mxu0 }
 0x64a   :  { %3564 = vrot.lane.b32.xlu0 %v3563_v0, %s4588_s3  ;;  %v3341_v3 = vpop.f32.mrb[31].mxu0  ;;  %v3609_v2 = vld [vmem:[%s4572_s11] sm:$0xff]  }
 0x64b   :  { %v3610_v3 = vld [vmem:[%s4572_s11 + $0x8] sm:$0xff]  }
 0x64f   :  { %v1126_v4 = vpop.f32.mrb[32].mxu0 }
 0x650   :  { %v3568_v5 = vpack.i.bf16 %v1126_v4, %v1078_v44  ;;  %v3352_v6 = vpop.f32.mrb[33].mxu0  ;;  %v3063_v44 = vld [vmem:[%s4568_s7] ss:$0 sm:$0xff]  ;;  %v3611_v4 = vld [vmem:[%s4572_s11 + $0x10] sm:$0xff]  }
 0x651   :  { %v1129_v7 = vpop.f32.mrb[34].mxu0  ;;  %v3065_v6 = vld [vmem:[%s4571_s10] ss:$0 sm:$0xff] }
 0x652   :  { %3569 = vrot.lane.b32.xlu1 %v3568_v5, %s4587_s28  ;;  %v3353_v8 = vpop.f32.mrb[35].mxu0  ;;  %v3612_v5 = vld [vmem:[%s4572_s11 + $0x18] sm:$0xff]  }
 0x687   :  { %v3560_v9 = vpop.permute.xlu1 %3559 }
 0x688   :  { %v3562_v11 = vunpack.i.h.bf16 %v3560_v9  ;;  %v3561_v61 = vunpack.i.l.bf16 %v3560_v9 }
 0x68a   :  { %v1157_v17 = vsel %vm253_vm2, %v838_v28, %v3562_v11  ;;  %v1156_v50 = vsel %vm253_vm2, %v790_v35, %v3561_v61 }
 0x6bc   :  { %v3565_v10 = vpop.permute.xlu0 %3564 }
 0x6bd   :  { %v3567_v12 = vunpack.i.h.bf16 %v3565_v10  ;;  %v3566_v13 = vunpack.i.l.bf16 %v3565_v10 }
 0x6bf   :  { %v1160_v14 = vsel %vm1158_vm4, %v1157_v17, %v3567_v12  ;;  %v1159_v18 = vsel %vm1158_vm4, %v1156_v50, %v3566_v13 }
 0x6c4   :  { %v3570_v16 = vpop.permute.xlu1 %3569 }
 0x6c5   :  { %v3572_v42 = vunpack.i.h.bf16 %v3570_v16  ;;  %v3571_v51 = vunpack.i.l.bf16 %v3570_v16 }
 0x6c7   :  { %v1163_v19 = vsel %vm1161_vm5, %v1160_v14, %v3572_v42  ;;  %v1162_v20 = vsel %vm1161_vm5, %v1159_v18, %v3571_v51 }
 0x6c8   :  { %v1164_v21 = vpack.c.bf16 %v1163_v19, %v1162_v20 }
 0x6ca   :  { %3359 = vmatmul.mubr.msk.bf16.vlgmr.msra.gmra.mrb[32].mxu1 %vm87_vm0, %v1164_v21 }
 0x6cb   :  { %3378 = vmatprep.mubr.msk.bf16.mxu1 %vm3789_vm1, %v3788_v15  ;;  %3371 = vmatpush3.bf16.msra.mxu1 %v3609_v2 }
 0x6cc   :  { %3372 = vmatprep.subr.bf16.mxu1 %v3788_v15 }
 0x6cf   :  { %3373 = vmatpush3.bf16.msra.mxu1 %v3610_v3 }
 0x6d0   :  { %3374 = vmatprep.subr.bf16.mxu1 %v3788_v15 }
 0x6d3   :  { %3375 = vmatpush3.bf16.msra.mxu1 %v3611_v4  ;;  %v3076_v4 = vld [vmem:[%s4575_s14] ss:$0 sm:$0xff] }
 0x6d4   :  { %3376 = vmatprep.subr.bf16.mxu1 %v3788_v15 }
 0x6d7   :  { %3377 = vmatpush3.bf16.msra.mxu1 %v3612_v5 }
 0x6d8   :  { %3396 = vmatprep.subr.bf16.mxu1 %v3788_v15 }
 0x79d   :  { %v1220_v23 = vpop.f32.mrb[32].mxu1 }
 0x79e   :  { %v1221_v24 = vadd.f32 %v3059_v22, %v1220_v23  ;;  %v3360_v25 = vpop.f32.mrb[33].mxu1 }
 0x79f   :  { %v1223_v26 = vpop.f32.mrb[34].mxu1 }
 0x7a0   :  { %v1224_v27 = vadd.f32 %v3059_v22, %v1223_v26  ;;  %v3361_v56 = vpop.f32.mrb[35].mxu1  ;;  %v1227_v29 = vadd.f32 %v1221_v24, %v3943_v31 }
 0x7a2   :  { %v1229_v28 = vsel %vm87_vm0, %v1227_v29, 0.0  ;;  %v1228_v30 = vadd.f32 %v1224_v27, %v3945_v32  ;;  %v3607_v32 = vld [vmem:[%s4570_s9] sm:$0xff]  }
 0x7a3   :  { %1230 = vadd.xlane.f32.xlu0 %v1229_v28  ;;  %3363 = vmatpush3.bf16.msra.mxu0 %v3607_v32 }
 0x7a4   :  { %v1232_v33 = vsel %vm87_vm0, %v1228_v30, 0.0  ;;  %3364 = vmatprep.subr.bf16.mxu0 %v3788_v15 }
 0x7a5   :  { %1233 = vadd.xlane.f32.xlu1 %v1232_v33 }
 0x7a7   :  { %3365 = vmatpush3.bf16.msra.mxu0 %v3608_v45 }
 0x7a8   :  { %3382 = vmatprep.subr.bf16.mxu0 %v3788_v15 }
 0x830   :  { %v1231_v34 = vpop.xlane.xlu0 %1230 }
 0x831   :  { %v1235_v35 = vmul.f32 0.03125, %v1231_v34 }
 0x832   :  { %v1234_v36 = vpop.xlane.xlu1 %1233 }
 0x833   :  { %v1237_v37 = vsub.f32 %v1227_v29, %v1235_v35  ;;  %v1236_v38 = vmul.f32 0.03125, %v1234_v36  ;;  %v3069_v29 = vld [vmem:[%s4573_s12] ss:$0 sm:$0xff] }
 0x835   :  { %v1238_v39 = vsub.f32 %v1228_v30, %v1236_v38  ;;  %v1239_v40 = vmul.f32 %v1237_v37, %v1237_v37 }
 0x837   :  { %v1241_v41 = vsel %vm87_vm0, %v1239_v40, 0.0  ;;  %v1240_v43 = vmul.f32 %v1238_v39, %v1238_v39 }
 0x838   :  { %1242 = vadd.xlane.f32.xlu0 %v1241_v41 }
 0x839   :  { %v1244_v31 = vsel %vm87_vm0, %v1240_v43, 0.0 }
 0x83c   :  { %1245 = vadd.xlane.f32.xlu0 %v1244_v31 }
 0x8c5   :  { %v1243_v46 = vpop.xlane.xlu0 %1242 }
 0x8c6   :  { %v1247_v47 = vmul.f32 0.03125, %v1243_v46 }
 0x8c8   :  { %v1249_v48 = vadd.f32 1e-05, %v1247_v47 }
 0x8c9   :  { %v1246_v49 = vpop.xlane.xlu0 %1245 }
 0x8ca   :  { %3663 = vrsqrt.f32 %v1249_v48  ;;  %v1248_v52 = vmul.f32 0.03125, %v1246_v49 }
 0x8cc   :  { %v1250_v55 = vadd.f32 1e-05, %v1248_v52 }
 0x8ce   :  { %3665 = vrsqrt.f32 %v1250_v55  ;;  %v3613_v55 = vld [vmem:[%s4596_s22 + $0x10] sm:$0xff]  }
 0x8d4   :  { %v3664_v53 = vpop.eup %3663 }
 0x8d5   :  { %v1253_v62 = vmul.f32 %v3664_v53, %v1237_v37  ;;  %v3614_v53 = vld [vmem:[%s4596_s22 + $0x18] sm:$0xff]  }
 0x8d7   :  { %v1261_v57 = vmul.f32 %v3063_v44, %v1253_v62 }
 0x8d8   :  { %v3666_v54 = vpop.eup %3665 }
 0x8d9   :  { %v1254_v58 = vmul.f32 %v3666_v54, %v1238_v39  ;;  %v1269_v63 = vadd.f32 %v3064_v59, %v1261_v57 }
 0x8db   :  { %v1262_v60 = vmul.f32 %v3063_v44, %v1254_v58 }
 0x8dd   :  { %v1270_v0 = vadd.f32 %v3064_v59, %v1262_v60 }
 0x8df   :  { %v1271_v1 = vpack.c.bf16 %v1270_v0, %v1269_v63 }
 0x8e1   :  { %3367 = vmatmul.mubr.msk.bf16.vlgmr.msra.gmra.mrb[36].mxu0 %vm87_vm0, %v1271_v1 }
 0x8e2   :  { %3386 = vmatprep.mubr.msk.bf16.mxu0 %vm3789_vm1, %v3788_v15  ;;  %3383 = vmatpush3.bf16.msra.mxu0 %v3613_v55 }
 0x8e3   :  { %3384 = vmatprep.subr.bf16.mxu0 %v3788_v15 }
 0x8e6   :  { %3385 = vmatpush3.bf16.msra.mxu0 %v3614_v53 }
 0x8e7   :  { %3390 = vmatprep.subr.bf16.mxu0 %v3788_v15 }
 0x9b4   :  { %v1327_v7 = vpop.f32.mrb[36].mxu0 }
 0x9b5   :  { %v1328_v8 = vadd.f32 %v3065_v6, %v1327_v7  ;;  %v3368_v9 = vpop.f32.mrb[37].mxu0 }
 0x9b6   :  { %v1330_v10 = vpop.f32.mrb[38].mxu0  ;;  %v3105_v9 = vld [vmem:[%s4599_s0 + $0x1] ss:$0 sm:$0xff] }
 0x9b7   :  { %v1334_v11 = vmul.f32 %v1328_v8, %v1328_v8  ;;  %v1331_v61 = vadd.f32 %v3065_v6, %v1330_v10  ;;  %v3369_v12 = vpop.f32.mrb[39].mxu0 }
 0x9b9   :  { %v1336_v13 = vmul.f32 %v1334_v11, %v1328_v8  ;;  %v1335_v16 = vmul.f32 %v1331_v61, %v1331_v61 }
 0x9bb   :  { %v1338_v17 = vmul.f32 0.044715, %v1336_v13  ;;  %v1337_v50 = vmul.f32 %v1335_v16, %v1331_v61 }
 0x9bd   :  { %v1340_v42 = vadd.f32 %v1338_v17, %v1328_v8  ;;  %v1339_v51 = vmul.f32 0.044715, %v1337_v50 }
 0x9bf   :  { %v1342_v14 = vmul.f32 0.7978846, %v1340_v42  ;;  %v1341_v18 = vadd.f32 %v1339_v51, %v1331_v61 }
 0x9c1   :  { %3667 = vtanh.f32 %v1342_v14  ;;  %v1343_v19 = vmul.f32 0.7978846, %v1341_v18 }
 0x9c3   :  { %3669 = vtanh.f32 %v1343_v19 }
 0x9cb   :  { %v3668_v20 = vpop.eup %3667 }
 0x9cc   :  { %v1346_v21 = vadd.f32 1.0, %v3668_v20 }
 0x9cd   :  { %v3670_v22 = vpop.eup %3669 }
 0x9ce   :  { %v1348_v23 = vmul.f32 0.5, %v1346_v21  ;;  %v1347_v24 = vadd.f32 1.0, %v3670_v22 }
 0x9d0   :  { %v1349_v25 = vmul.f32 0.5, %v1347_v24  ;;  %v1350_v26 = vmul.f32 %v1348_v23, %v1328_v8 }
 0x9d2   :  { %v1351_v27 = vmul.f32 %v1349_v25, %v1331_v61 }
 0x9d4   :  { %v1352_v56 = vpack.c.bf16 %v1351_v27, %v1350_v26 }
 0x9d6   :  { %3379 = vmatmul.mubr.msk.bf16.vlgmr.msra.gmra.mrb[36].mxu1 %vm1383_vm6, %v1352_v56 }
 0x9d7   :  { %3398 = vmatprep.mubr.msk.bf16.mxu1 %vm3789_vm1, %v3788_v15 }
 0xaa9   :  { %v1421_v28 = vpop.f32.mrb[36].mxu1 }
 0xaaa   :  { %v1422_v30 = vadd.f32 %v3069_v29, %v1421_v28  ;;  %v3380_v33 = vpop.f32.mrb[37].mxu1 }
 0xaab   :  { %v1424_v34 = vpop.f32.mrb[38].mxu1 }
 0xaac   :  { %v1425_v35 = vadd.f32 %v3069_v29, %v1424_v34  ;;  %v3381_v36 = vpop.f32.mrb[39].mxu1  ;;  %v1428_v37 = vadd.f32 %v1422_v30, %v1269_v63  ;;  %v3075_v63 = vld [vmem:[%s4574_s13] ss:$0 sm:$0xff] }
 0xaae   :  { %v1430_v38 = vsel %vm87_vm0, %v1428_v37, 0.0  ;;  %v1429_v39 = vadd.f32 %v1425_v35, %v1270_v0 }
 0xaaf   :  { %1431 = vadd.xlane.f32.xlu0 %v1430_v38 }
 0xab0   :  { %v1433_v40 = vsel %vm87_vm0, %v1429_v39, 0.0 }
 0xab1   :  { %1434 = vadd.xlane.f32.xlu1 %v1433_v40 }
 0xb3c   :  { %v1432_v41 = vpop.xlane.xlu0 %1431 }
 0xb3d   :  { %v1436_v43 = vmul.f32 0.03125, %v1432_v41 }
 0xb3e   :  { %v1435_v31 = vpop.xlane.xlu1 %1434 }
 0xb3f   :  { %v1438_v32 = vsub.f32 %v1428_v37, %v1436_v43  ;;  %v1437_v45 = vmul.f32 0.03125, %v1435_v31 }
 0xb41   :  { %v1439_v46 = vsub.f32 %v1429_v39, %v1437_v45  ;;  %v1440_v47 = vmul.f32 %v1438_v32, %v1438_v32 }
 0xb43   :  { %v1442_v48 = vsel %vm87_vm0, %v1440_v47, 0.0  ;;  %v1441_v49 = vmul.f32 %v1439_v46, %v1439_v46 }
 0xb44   :  { %1443 = vadd.xlane.f32.xlu0 %v1442_v48 }
 0xb45   :  { %v1445_v52 = vsel %vm87_vm0, %v1441_v49, 0.0 }
 0xb46   :  { %1446 = vadd.xlane.f32.xlu1 %v1445_v52 }
 0xbd1   :  { %v1444_v62 = vpop.xlane.xlu0 %1443 }
 0xbd2   :  { %v1448_v44 = vmul.f32 0.03125, %v1444_v62 }
 0xbd3   :  { %v1447_v54 = vpop.xlane.xlu1 %1446 }
 0xbd4   :  { %v1450_v57 = vadd.f32 1e-05, %v1448_v44  ;;  %v1449_v58 = vmul.f32 0.03125, %v1447_v54 }
 0xbd6   :  { %3671 = vrsqrt.f32 %v1450_v57  ;;  %v1451_v59 = vadd.f32 1e-05, %v1449_v58 }
 0xbd8   :  { %3673 = vrsqrt.f32 %v1451_v59 }
 0xbe0   :  { %v3672_v60 = vpop.eup %3671 }
 0xbe1   :  { %v1454_v0 = vmul.f32 %v3672_v60, %v1438_v32 }
 0xbe2   :  { %v3674_v1 = vpop.eup %3673 }
 0xbe3   :  { %v1462_v2 = vmul.f32 %v3075_v63, %v1454_v0  ;;  %v1455_v3 = vmul.f32 %v3674_v1, %v1439_v46 }
 0xbe5   :  { %v1463_v5 = vmul.f32 %v3075_v63, %v1455_v3  ;;  %v4230_v6 = vadd.f32 %v3076_v4, %v1462_v2 }
 0xbe7   :  { %v4232_v7 = vadd.f32 %v3076_v4, %v1463_v5 }
 0xbe9   :  { %v1512_v8 = vpack.c.bf16 %v4232_v7, %v4230_v6 }
 0xbeb   :  { %3387 = vmatmul.mubr.msk.bf16.vlgmr.msra.gmra.mrb[40].mxu0 %vm87_vm0, %v1512_v8 }
 0xbec   :  { %3392 = vmatprep.mubr.msk.bf16.mxu0 %vm3789_vm1, %v3788_v15 }
 0xcbe   :  { %v1568_v10 = vpop.f32.mrb[40].mxu0 }
 0xcbf   :  { %v3388_v11 = vpop.f32.mrb[41].mxu0  ;;  %v1569_v12 = vadd.f32 %v3105_v9, %v1568_v10 }
 0xcc0   :  { %v1571_v61 = vpop.f32.mrb[42].mxu0 }
 0xcc1   :  { %v1572_v13 = vadd.f32 %v3105_v9, %v1571_v61  ;;  %v3389_v16 = vpop.f32.mrb[43].mxu0  ;;  %v1595_v42 = vpack.c.bf16 %v1569_v12, %v1569_v12 }
 0xcc3   :  { %v3578_v17 = vpack.i.bf16 %v1572_v13, %v1569_v12  ;;  %v4244_v50 = vpack.c.bf16 %v1572_v13, %v1572_v13 }
 0xcc5   :  { %3579 = vrot.lane.b32.xlu1 %v3578_v17, %s3790_s4  ;;  %3574 = vrot.lane.b32.xlu0 %v3578_v17, %s3791_s19 }
 0xcc9   :  { %3584 = vrot.lane.b32.xlu1 %v3578_v17, %s3792_s30  ;;  %1653 = vrot.lane.b32.xlu0 %v4244_v50, %s3793_s5 }
 0xccd   :  { %1604 = vrot.lane.b32.xlu1 %v1595_v42, %s3793_s5 }
 0xd37   :  { %v3580_v51 = vpop.permute.xlu1 %3579  ;;  %v3575_v14 = vpop.permute.xlu0 %3574 }
 0xd38   :  { %v3577_v18 = vunpack.i.h.bf16 %v3575_v14  ;;  %v3576_v19 = vunpack.i.l.bf16 %v3575_v14  ;;  %v3582_v20 = vunpack.i.h.bf16 %v3580_v51  ;;  %v3581_v21 = vunpack.i.l.bf16 %v3580_v51 }
 0xd3a   :  { %v4250_v22 = vpack.c.bf16 %v3577_v18, %v3577_v18  ;;  %v4252_v23 = vpack.c.bf16 %v3576_v19, %v3576_v19  ;;  %v4259_v27 = vpack.c.bf16 %v3582_v20, %v3582_v20  ;;  %v4261_v56 = vpack.c.bf16 %v3581_v21, %v3581_v21 }
 0xd3b   :  { %v3585_v24 = vpop.permute.xlu1 %3584  ;;  %v1654_v25 = vpop.permute.xlu0 %1653 }
 0xd3c   :  { %v1659_v26 = vsel %vm253_vm2, %v1654_v25, 0  ;;  %1702 = vrot.lane.b32.xlu1 %v4252_v23, %s3793_s5  ;;  %1751 = vrot.lane.b32.xlu0 %v4250_v22, %s3793_s5  ;;  %v3587_v29 = vunpack.i.h.bf16 %v3585_v24  ;;  %v3586_v28 = vunpack.i.l.bf16 %v3585_v24 }
 0xd3d   :  { %3397 = vmatpush3.bf16.xpose.msra.mxu1 %v1659_v26 }
 0xd3e   :  { %3408 = vmatprep.subr.bf16.mxu1 %v3788_v15  ;;  %v4269_v34 = vpack.c.bf16 %v3587_v29, %v3587_v29  ;;  %v4271_v35 = vpack.c.bf16 %v3586_v28, %v3586_v28 }
 0xd3f   :  { %v1605_v30 = vpop.permute.xlu1 %1604 }
 0xd40   :  { %v1610_v33 = vsel %vm253_vm2, %v1605_v30, 0  ;;  %1800 = vrot.lane.b32.xlu1 %v4261_v56, %s3793_s5  ;;  %1849 = vrot.lane.b32.xlu0 %v4259_v27, %s3793_s5 }
 0xd41   :  { %3391 = vmatpush3.bf16.xpose.msra.mxu0 %v1610_v33 }
 0xd42   :  { %3402 = vmatprep.subr.bf16.mxu0 %v3788_v15 }
 0xd44   :  { %1898 = vrot.lane.b32.xlu1 %v4271_v35, %s3793_s5  ;;  %1947 = vrot.lane.b32.xlu0 %v4269_v34, %s3793_s5  ;;  %s4601_s5 = smov 16  }
 0xd45   :  { %3399 = vmatmul.mubr.msk.bf16.vlgmr.msra.gmra.mrb[40].mxu1 %vm253_vm2, %v4244_v50 }
 0xd46   :  { %3410 = vmatprep.mubr.msk.bf16.mxu1 %vm3789_vm1, %v3788_v15 }
 0xd48   :  { %3393 = vmatmul.mubr.msk.bf16.vlgmr.msra.gmra.mrb[44].mxu0 %vm253_vm2, %v1595_v42  ;;  %2099 = vrot.lane.b32.xlu1 %v1595_v42, %s3794_s23 }
 0xd49   :  { %3404 = vmatprep.mubr.msk.bf16.mxu0 %vm3789_vm1, %v3788_v15 }
 0xdae   :  { %v1703_v36 = vpop.permute.xlu1 %1702  ;;  %v1752_v37 = vpop.permute.xlu0 %1751 }
 0xdaf   :  { %v1708_v38 = vsel %vm253_vm2, %v1703_v36, 0  ;;  %v1757_v39 = vsel %vm253_vm2, %v1752_v37, 0 }
 0xdb0   :  { %3403 = vmatpush3.bf16.xpose.msra.mxu0 %v1708_v38  ;;  %3409 = vmatpush3.bf16.xpose.msra.mxu1 %v1757_v39 }
 0xdb1   :  { %3414 = vmatprep.subr.bf16.mxu0 %v3788_v15  ;;  %3420 = vmatprep.subr.bf16.mxu1 %v3788_v15 }
 0xdb2   :  { %v1801_v40 = vpop.permute.xlu1 %1800  ;;  %v1850_v41 = vpop.permute.xlu0 %1849 }
 0xdb3   :  { %v1806_v43 = vsel %vm253_vm2, %v1801_v40, 0  ;;  %v1855_v31 = vsel %vm253_vm2, %v1850_v41, 0 }
 0xdb6   :  { %v1899_v32 = vpop.permute.xlu1 %1898  ;;  %v1948_v45 = vpop.permute.xlu0 %1947 }
 0xdb7   :  { %3405 = vmatmul.mubr.msk.bf16.vlgmr.msra.gmra.mrb[48].mxu0 %vm253_vm2, %v4252_v23  ;;  %3411 = vmatmul.mubr.msk.bf16.vlgmr.msra.gmra.mrb[44].mxu1 %vm253_vm2, %v4250_v22  ;;  %v1904_v46 = vsel %vm253_vm2, %v1899_v32, 0  ;;  %v1953_v47 = vsel %vm253_vm2, %v1948_v45, 0 }
 0xdb8   :  { %3415 = vmatpush3.bf16.xpose.msra.mxu0 %v1806_v43  ;;  %3421 = vmatpush3.bf16.xpose.msra.mxu1 %v1855_v31 }
 0xdb9   :  { %3416 = vmatprep.mubr.msk.bf16.mxu0 %vm3789_vm1, %v3788_v15  ;;  %3422 = vmatprep.mubr.msk.bf16.mxu1 %vm3789_vm1, %v3788_v15 }
 0xdba   :  { %3426 = vmatprep.subr.bf16.mxu0 %v3788_v15  ;;  %3432 = vmatprep.subr.bf16.mxu1 %v3788_v15  ;;  %v2100_v48 = vpop.permute.xlu1 %2099 }
 0xdbb   :  { %v2105_v49 = vsel %vm752_vm3, %v2100_v48, 0 }
 0xdbf   :  { %3417 = vmatmul.mubr.msk.bf16.vlgmr.msra.gmra.mrb[52].mxu0 %vm253_vm2, %v4261_v56  ;;  %3423 = vmatmul.mubr.msk.bf16.vlgmr.msra.gmra.mrb[48].mxu1 %vm253_vm2, %v4259_v27 }
 0xdc0   :  { %3427 = vmatpush3.bf16.xpose.msra.mxu0 %v1904_v46  ;;  %3433 = vmatpush3.bf16.xpose.msra.mxu1 %v1953_v47 }
 0xdc1   :  { %3428 = vmatprep.mubr.msk.bf16.mxu0 %vm3789_vm1, %v3788_v15  ;;  %3434 = vmatprep.mubr.msk.bf16.mxu1 %vm3789_vm1, %v3788_v15 }
 0xdc2   :  { %3438 = vmatprep.subr.bf16.mxu0 %v3788_v15  ;;  %3444 = vmatprep.subr.bf16.mxu1 %v3788_v15 }
 0xdc7   :  { %3429 = vmatmul.mubr.msk.bf16.vlgmr.msra.gmra.mrb[56].mxu0 %vm253_vm2, %v4271_v35  ;;  %3435 = vmatmul.mubr.msk.bf16.vlgmr.msra.gmra.mrb[52].mxu1 %vm253_vm2, %v4269_v34 }
 0xdc8   :  { %3439 = vmatpush3.bf16.msra.mxu0 %v2105_v49  ;;  %3446 = vmatprep.mubr.msk.bf16.mxu1 %vm3789_vm1, %v3788_v15 }
 0xdc9   :  { %3440 = vmatprep.mubr.msk.bf16.mxu0 %vm3789_vm1, %v3788_v15  ;;  %3450 = vmatprep.subr.bf16.mxu0 %v3788_v15 }
 0xe18   :  { %v1695_v52 = vpop.f32.mrb[40].mxu1 }
 0xe19   :  { %v1996_v55 = vmul.f32 0.35355338, %v1695_v52  ;;  %v3400_v53 = vpop.f32.mrb[41].mxu1 }
 0xe1a   :  { %v1698_v62 = vpop.f32.mrb[42].mxu1 }
 0xe1b   :  { %v3401_v44 = vpop.f32.mrb[43].mxu1  ;;  %v2006_v54 = vsel %vm253_vm2, %v1996_v55, -inf  ;;  %v1646_v57 = vpop.f32.mrb[44].mxu0 }
 0xe1c   :  { %2007 = vmax.xlane.f32.xlu0 %v2006_v54  ;;  %v1995_v58 = vmul.f32 0.35355338, %v1646_v57  ;;  %v3394_v59 = vpop.f32.mrb[45].mxu0 }
 0xe1d   :  { %v1649_v60 = vpop.f32.mrb[46].mxu0 }
 0xe1e   :  { %v3395_v63 = vpop.f32.mrb[47].mxu0  ;;  %v2003_v0 = vsel %vm253_vm2, %v1995_v58, -inf }
 0xe1f   :  { %2004 = vmax.xlane.f32.xlu1 %v2003_v0 }
 0xe8a   :  { %v1744_v1 = vpop.f32.mrb[48].mxu0  ;;  %v1793_v2 = vpop.f32.mrb[44].mxu1 }
 0xe8b   :  { %v1997_v3 = vmul.f32 0.35355338, %v1744_v1  ;;  %v3406_v4 = vpop.f32.mrb[49].mxu0  ;;  %v3412_v5 = vpop.f32.mrb[45].mxu1  ;;  %v1998_v10 = vmul.f32 0.35355338, %v1793_v2 }
 0xe8c   :  { %v1747_v8 = vpop.f32.mrb[50].mxu0  ;;  %v1796_v9 = vpop.f32.mrb[46].mxu1 }
 0xe8d   :  { %v3407_v11 = vpop.f32.mrb[51].mxu0  ;;  %v3413_v61 = vpop.f32.mrb[47].mxu1  ;;  %v2009_v12 = vsel %vm253_vm2, %v1997_v3, -inf  ;;  %v2012_v13 = vsel %vm253_vm2, %v1998_v10, -inf }
 0xe8e   :  { %2010 = vmax.xlane.f32.xlu0 %v2009_v12 }
 0xe92   :  { %v1891_v16 = vpop.f32.mrb[48].mxu1  ;;  %2013 = vmax.xlane.f32.xlu0 %v2012_v13  ;;  %v1842_v17 = vpop.f32.mrb[52].mxu0 }
 0xe93   :  { %v4328_v42 = vmul.f32 0.35355338, %v1891_v16  ;;  %v1999_v51 = vmul.f32 0.35355338, %v1842_v17  ;;  %v3418_v14 = vpop.f32.mrb[53].mxu0  ;;  %v3424_v18 = vpop.f32.mrb[49].mxu1 }
 0xe94   :  { %v1845_v19 = vpop.f32.mrb[54].mxu0  ;;  %v1894_v20 = vpop.f32.mrb[50].mxu1 }
 0xe95   :  { %v3419_v21 = vpop.f32.mrb[55].mxu0  ;;  %v3425_v24 = vpop.f32.mrb[51].mxu1  ;;  %v2018_v25 = vsel %vm253_vm2, %v4328_v42, -inf  ;;  %v2015_v26 = vsel %vm253_vm2, %v1999_v51, -inf }
 0xe96   :  { %2019 = vmax.xlane.f32.xlu0 %v2018_v25  ;;  %2016 = vmax.xlane.f32.xlu1 %v2015_v26 }
 0xe9a   :  { %v1940_v29 = vpop.f32.mrb[56].mxu0  ;;  %v1989_v28 = vpop.f32.mrb[52].mxu1 }
 0xe9b   :  { %v2001_v30 = vmul.f32 0.35355338, %v1940_v29  ;;  %v4333_v33 = vmul.f32 0.35355338, %v1989_v28  ;;  %v3430_v36 = vpop.f32.mrb[57].mxu0  ;;  %v3436_v37 = vpop.f32.mrb[53].mxu1 }
 0xe9c   :  { %v1943_v38 = vpop.f32.mrb[58].mxu0  ;;  %v1992_v39 = vpop.f32.mrb[54].mxu1 }
 0xe9d   :  { %v3431_v40 = vpop.f32.mrb[59].mxu0  ;;  %v3437_v41 = vpop.f32.mrb[55].mxu1  ;;  %v2024_v43 = vsel %vm253_vm2, %v4333_v33, -inf  ;;  %v2021_v31 = vsel %vm253_vm2, %v2001_v30, -inf }
 0xe9e   :  { %2025 = vmax.xlane.f32.xlu0 %v2024_v43  ;;  %2022 = vmax.xlane.f32.xlu1 %v2021_v31 }
 0xea9   :  { %v2008_v32 = vpop.xlane.xlu0 %2007 }
 0xeaa   :  { %v2028_v45 = vsub.f32 %v1996_v55, %v2008_v32 }
 0xeac   :  { %v2005_v46 = vpop.xlane.xlu1 %2004  ;;  %v2037_v47 = vmul.f32 1.442695, %v2028_v45 }
 0xead   :  { %v2027_v48 = vsub.f32 %v1995_v58, %v2005_v46 }
 0xeae   :  { %3675 = vpow2.f32 %v2037_v47 }
 0xeaf   :  { %2195 = vrot.lane.b32.xlu1 %v4252_v23, %s3794_s23  ;;  %v2035_v49 = vmul.f32 1.442695, %v2027_v48 }
 0xeb1   :  { %3677 = vpow2.f32 %v2035_v49 }
 0xeb3   :  { %2243 = vrot.lane.b32.xlu1 %v4250_v22, %s3794_s23 }
 0xeb4   :  { %2147 = vrot.lane.b32.xlu0 %v4244_v50, %s3794_s23 }
 0xeb8   :  { %v3676_v52 = vpop.eup %3675 }
 0xeb9   :  { %v2054_v53 = vsel %vm253_vm2, %v3676_v52, 0.0 }
 0xebb   :  { %v4345_v62 = vpop.eup %3677 }
 0xebc   :  { %v2051_v22 = vsel %vm253_vm2, %v4345_v62, 0.0 }
 0xed3   :  { %2055 = vadd.xlane.f32.xlu0 %v2054_v53 }
 0xed7   :  { %2052 = vadd.xlane.f32.xlu1 %v2051_v22 }
 0xee8   :  { %2291 = vrot.lane.b32.xlu1 %v4261_v56, %s3794_s23 }
 0xf1b   :  { %v2011_v50 = vpop.xlane.xlu0 %2010 }
 0xf1c   :  { %v2029_v23 = vsub.f32 %v1997_v3, %v2011_v50 }
 0xf1e   :  { %v2039_v55 = vmul.f32 1.442695, %v2029_v23 }
 0xf1f   :  { %v2014_v44 = vpop.xlane.xlu0 %2013 }
 0xf20   :  { %3679 = vpow2.f32 %v2039_v55  ;;  %v2030_v54 = vsub.f32 %v1998_v10, %v2014_v44 }
 0xf22   :  { %v2041_v57 = vmul.f32 1.442695, %v2030_v54 }
 0xf23   :  { %v2017_v58 = vpop.xlane.xlu1 %2016  ;;  %v2020_v63 = vpop.xlane.xlu0 %2019 }
 0xf24   :  { %3681 = vpow2.f32 %v2041_v57  ;;  %v2031_v59 = vsub.f32 %v1999_v51, %v2017_v58  ;;  %v2032_v16 = vsub.f32 %v4328_v42, %v2020_v63 }
 0xf26   :  { %v2043_v60 = vmul.f32 1.442695, %v2031_v59  ;;  %v2045_v17 = vmul.f32 1.442695, %v2032_v16 }
 0xf28   :  { %3683 = vpow2.f32 %v2043_v60 }
 0xf2a   :  { %v4351_v0 = vpop.eup %3679 }
 0xf2b   :  { %v2026_v1 = vpop.xlane.xlu0 %2025  ;;  %v2023_v2 = vpop.xlane.xlu1 %2022  ;;  %v2057_v56 = vsel %vm253_vm2, %v4351_v0, 0.0 }
 0xf2c   :  { %v2033_v4 = vsub.f32 %v2001_v30, %v2023_v2  ;;  %2058 = vadd.xlane.f32.xlu1 %v2057_v56  ;;  %v2034_v51 = vsub.f32 %v4333_v33, %v2026_v1 }
 0xf2e   :  { %v4355_v3 = vpop.eup %3681  ;;  %v2047_v5 = vmul.f32 1.442695, %v2033_v4  ;;  %v2049_v14 = vmul.f32 1.442695, %v2034_v51 }
 0xf2f   :  { %v2148_v8 = vpop.permute.xlu0 %2147  ;;  %v2060_v9 = vsel %vm253_vm2, %v4355_v3, 0.0  ;;  %v2196_v18 = vpop.permute.xlu1 %2195 }
 0xf30   :  { %v2153_v10 = vsel %vm752_vm3, %v2148_v8, 0  ;;  %2061 = vadd.xlane.f32.xlu0 %v2060_v9  ;;  %3685 = vpow2.f32 %v2047_v5  ;;  %v2201_v37 = vsel %vm752_vm3, %v2196_v18, 0 }
 0xf31   :  { %3445 = vmatpush3.bf16.msra.mxu1 %v2153_v10  ;;  %3687 = vpow2.f32 %v2045_v17 }
 0xf32   :  { %3456 = vmatprep.subr.bf16.mxu1 %v3788_v15  ;;  %v4361_v11 = vpop.eup %3683  ;;  %3689 = vpow2.f32 %v2049_v14 }
 0xf33   :  { %v2063_v61 = vsel %vm253_vm2, %v4361_v11, 0.0  ;;  %v2244_v19 = vpop.permute.xlu1 %2243 }
 0xf34   :  { %2064 = vadd.xlane.f32.xlu1 %v2063_v61  ;;  %v2249_v30 = vsel %vm752_vm3, %v2244_v19, 0 }
 0xf3a   :  { %v4365_v12 = vpop.eup %3685 }
 0xf3b   :  { %v2069_v13 = vsel %vm253_vm2, %v4365_v12, 0.0  ;;  %v4375_v21 = vpop.eup %3687 }
 0xf3c   :  { %2070 = vadd.xlane.f32.xlu1 %v2069_v13  ;;  %v4379_v25 = vpop.eup %3689 }
 0xf46   :  { %2339 = vrot.lane.b32.xlu0 %v4259_v27, %s3794_s23  ;;  %v2066_v27 = vsel %vm253_vm2, %v4375_v21, 0.0 }
 0xf4d   :  { %2387 = vrot.lane.b32.xlu1 %v4271_v35, %s3794_s23  ;;  %v2072_v35 = vsel %vm253_vm2, %v4379_v25, 0.0 }
 0xf60   :  { %v2056_v20 = vpop.xlane.xlu0 %2055 }
 0xf61   :  { %3691 = vrcp.f32 %v2056_v20 }
 0xf64   :  { %v2053_v24 = vpop.xlane.xlu1 %2052 }
 0xf65   :  { %3693 = vrcp.f32 %v2053_v24  ;;  %2067 = vadd.xlane.f32.xlu0 %v2066_v27 }
 0xf68   :  { %v2292_v38 = vpop.permute.xlu1 %2291 }
 0xf69   :  { %2073 = vadd.xlane.f32.xlu0 %v2072_v35  ;;  %v2297_v46 = vsel %vm752_vm3, %v2292_v38, 0 }
 0xf6b   :  { %v3692_v42 = vpop.eup %3691 }
 0xf6c   :  { %v2084_v26 = vmul.f32 %v3692_v42, %v3676_v52 }
 0xf6e   :  { %v2092_v29 = vpack.c.bf16 %v2084_v26, %v2084_v26 }
 0xf6f   :  { %v3694_v28 = vpop.eup %3693 }
 0xf70   :  { %v2083_v33 = vmul.f32 %v3694_v28, %v4345_v62  ;;  %3447 = vmatmul.mubr.msk.bf16.vlgmr.msra.gmra.mrb[56].mxu1 %vm253_vm2, %v2092_v29 }
 0xf71   :  { %3457 = vmatpush3.bf16.msra.mxu1 %v2249_v30  ;;  %3458 = vmatprep.mubr.msk.bf16.mxu1 %vm3789_vm1, %v3788_v15  ;;  %v3615_v30 = vld [vmem:[%s4600_s25 + $0x10] sm:$0xff]  }
 0xf72   :  { %v2091_v36 = vpack.c.bf16 %v2083_v33, %v2083_v33  ;;  %3468 = vmatprep.subr.bf16.mxu1 %v3788_v15 }
 0xf74   :  { %3441 = vmatmul.mubr.msk.bf16.vlgmr.msra.gmra.mrb[60].mxu0 %vm253_vm2, %v2091_v36  ;;  %v3616_v36 = vld [vmem:[%s4600_s25 + $0x18] sm:$0xff]  }
 0xf75   :  { %3451 = vmatpush3.bf16.msra.mxu0 %v2201_v37  ;;  %3452 = vmatprep.mubr.msk.bf16.mxu0 %vm3789_vm1, %v3788_v15 }
 0xf76   :  { %3462 = vmatprep.subr.bf16.mxu0 %v3788_v15 }
 0xf7f   :  { %2435 = vrot.lane.b32.xlu0 %v4269_v34, %s3794_s23  ;;  %s4602_s23 = smov 24  }
 0xfb9   :  { %v2059_v39 = vpop.xlane.xlu1 %2058 }
 0xfba   :  { %3695 = vrcp.f32 %v2059_v39 }
 0xfbd   :  { %v2062_v40 = vpop.xlane.xlu0 %2061 }
 0xfbe   :  { %3697 = vrcp.f32 %v2062_v40 }
 0xfc1   :  { %v2065_v41 = vpop.xlane.xlu1 %2064  ;;  %v2340_v48 = vpop.permute.xlu0 %2339 }
 0xfc2   :  { %3699 = vrcp.f32 %v2065_v41  ;;  %v2345_v53 = vsel %vm752_vm3, %v2340_v48, 0 }
 0xfc4   :  { %v3696_v43 = vpop.eup %3695 }
 0xfc5   :  { %v2085_v31 = vmul.f32 %v3696_v43, %v4351_v0 }
 0xfc7   :  { %v2093_v32 = vpack.c.bf16 %v2085_v31, %v2085_v31 }
 0xfc8   :  { %v3698_v45 = vpop.eup %3697 }
 0xfc9   :  { %v2086_v47 = vmul.f32 %v3698_v45, %v4355_v3  ;;  %3453 = vmatmul.mubr.msk.bf16.vlgmr.msra.gmra.mrb[64].mxu0 %vm253_vm2, %v2093_v32  ;;  %v2071_v34 = vpop.xlane.xlu1 %2070 }
 0xfca   :  { %3463 = vmatpush3.bf16.msra.mxu0 %v2297_v46  ;;  %3464 = vmatprep.mubr.msk.bf16.mxu0 %vm3789_vm1, %v3788_v15  ;;  %3701 = vrcp.f32 %v2071_v34 }
 0xfcb   :  { %v2094_v49 = vpack.c.bf16 %v2086_v47, %v2086_v47  ;;  %3474 = vmatprep.subr.bf16.mxu0 %v3788_v15 }
 0xfcc   :  { %v3700_v52 = vpop.eup %3699 }
 0xfcd   :  { %3459 = vmatmul.mubr.msk.bf16.vlgmr.msra.gmra.mrb[60].mxu1 %vm253_vm2, %v2094_v49  ;;  %v2087_v62 = vmul.f32 %v3700_v52, %v4361_v11  ;;  %v2388_v22 = vpop.permute.xlu1 %2387 }
 0xfce   :  { %3469 = vmatpush3.bf16.msra.mxu1 %v2345_v53  ;;  %3470 = vmatprep.mubr.msk.bf16.mxu1 %vm3789_vm1, %v3788_v15  ;;  %v2393_v23 = vsel %vm752_vm3, %v2388_v22, 0 }
 0xfcf   :  { %3480 = vmatprep.subr.bf16.mxu1 %v3788_v15  ;;  %v2095_v50 = vpack.c.bf16 %v2087_v62, %v2087_v62 }
 0xfd1   :  { %3465 = vmatmul.mubr.msk.bf16.vlgmr.msra.gmra.mrb[68].mxu0 %vm253_vm2, %v2095_v50 }
 0xfd2   :  { %3475 = vmatpush3.bf16.msra.mxu0 %v2393_v23  ;;  %3476 = vmatprep.mubr.msk.bf16.mxu0 %vm3789_vm1, %v3788_v15 }
 0xfd3   :  { %3486 = vmatprep.subr.bf16.mxu0 %v3788_v15 }
 0xfd4   :  { %v3702_v55 = vpop.eup %3701 }
 0xfd5   :  { %v2089_v44 = vmul.f32 %v3702_v55, %v4365_v12 }
 0xfd7   :  { %v2097_v54 = vpack.c.bf16 %v2089_v44, %v2089_v44 }
 0xfd9   :  { %3477 = vmatmul.mubr.msk.bf16.vlgmr.msra.gmra.mrb[72].mxu0 %vm253_vm2, %v2097_v54 }
 0xfda   :  { %3490 = vmatprep.mubr.msk.bf16.mxu0 %vm3789_vm1, %v3788_v15  ;;  %3487 = vmatpush3.bf16.msra.mxu0 %v3615_v30  ;;  %v3130_v30 = vld [vmem:[%s4569_s8 + $0x1] ss:$0 sm:$0xff] }
 0xfdb   :  { %3488 = vmatprep.subr.bf16.mxu0 %v3788_v15 }
 0xfde   :  { %3489 = vmatpush3.bf16.msra.mxu0 %v3616_v36 }
 0xfdf   :  { %3502 = vmatprep.subr.bf16.mxu0 %v3788_v15 }
 0xff2   :  { %v2068_v57 = vpop.xlane.xlu0 %2067 }
 0xff3   :  { %3703 = vrcp.f32 %v2068_v57 }
 0xff6   :  { %v2074_v58 = vpop.xlane.xlu0 %2073 }
 0xff7   :  { %3705 = vrcp.f32 %v2074_v58 }
 0xffa   :  { %v2436_v63 = vpop.permute.xlu0 %2435 }
 0xffb   :  { %v2441_v2 = vsel %vm752_vm3, %v2436_v63, 0 }
 0xffd   :  { %v3704_v59 = vpop.eup %3703 }
 0xffe   :  { %v2088_v60 = vmul.f32 %v3704_v59, %v4375_v21  ;;  %v3125_v59 = vld [vmem:[%s4567_s6 + $0x1] ss:$0 sm:$0xff] }
0x1000   :  { %v2096_v0 = vpack.c.bf16 %v2088_v60, %v2088_v60 }
0x1001   :  { %v3706_v1 = vpop.eup %3705 }
0x1002   :  { %3471 = vmatmul.mubr.msk.bf16.vlgmr.msra.gmra.mrb[64].mxu1 %vm253_vm2, %v2096_v0  ;;  %v2090_v56 = vmul.f32 %v3706_v1, %v4379_v25 }
0x1003   :  { %3481 = vmatpush3.bf16.msra.mxu1 %v2441_v2  ;;  %3482 = vmatprep.mubr.msk.bf16.mxu1 %vm3789_vm1, %v3788_v15 }
0x1004   :  { %3494 = vmatprep.subr.bf16.mxu1 %v3788_v15  ;;  %v2098_v4 = vpack.c.bf16 %v2090_v56, %v2090_v56 }
0x100a   :  { %3483 = vmatmul.mubr.msk.bf16.vlgmr.msra.gmra.mrb[68].mxu1 %vm253_vm2, %v2098_v4 }
0x100b   :  { %3498 = vmatprep.mubr.msk.bf16.mxu1 %vm3789_vm1, %v3788_v15 }
0x1043   :  { %v2189_v3 = vpop.f32.mrb[56].mxu1 }
0x1044   :  { %v3448_v5 = vpop.f32.mrb[57].mxu1 }
0x1045   :  { %v2192_v8 = vpop.f32.mrb[58].mxu1 }
0x1046   :  { %v3449_v9 = vpop.f32.mrb[59].mxu1 }
0x1047   :  { %v2141_v10 = vpop.f32.mrb[60].mxu0 }
0x1048   :  { %v3442_v11 = vpop.f32.mrb[61].mxu0 }
0x1049   :  { %v2144_v61 = vpop.f32.mrb[62].mxu0 }
0x104a   :  { %v3443_v12 = vpop.f32.mrb[63].mxu0 }
0x109c   :  { %v2237_v13 = vpop.f32.mrb[64].mxu0 }
0x109d   :  { %v3454_v16 = vpop.f32.mrb[65].mxu0 }
0x109e   :  { %v2240_v17 = vpop.f32.mrb[66].mxu0 }
0x109f   :  { %v3455_v51 = vpop.f32.mrb[67].mxu0 }
0x10a0   :  { %v2285_v14 = vpop.f32.mrb[60].mxu1 }
0x10a1   :  { %v3588_v18 = vpack.i.bf16 %v2285_v14, %v2237_v13  ;;  %v3460_v19 = vpop.f32.mrb[61].mxu1  ;;  %v3618_v14 = vld [vmem:[%s4570_s9 + $0x18] sm:$0xff]  }
0x10a2   :  { %v2288_v20 = vpop.f32.mrb[62].mxu1 }
0x10a3   :  { %v3461_v21 = vpop.f32.mrb[63].mxu1  ;;  %3589 = vrot.lane.b32.xlu1 %v3588_v18, %s3795_s1 }
0x10a4   :  { %v2333_v24 = vpop.f32.mrb[68].mxu0 }
0x10a5   :  { %v3466_v27 = vpop.f32.mrb[69].mxu0 }
0x10a6   :  { %v2336_v25 = vpop.f32.mrb[70].mxu0 }
0x10a7   :  { %v3467_v35 = vpop.f32.mrb[71].mxu0 }
0x10ac   :  { %v2429_v42 = vpop.f32.mrb[72].mxu0 }
0x10ad   :  { %v3478_v26 = vpop.f32.mrb[73].mxu0 }
0x10ae   :  { %v2432_v29 = vpop.f32.mrb[74].mxu0 }
0x10af   :  { %v3479_v28 = vpop.f32.mrb[75].mxu0 }
0x10d5   :  { %v2381_v33 = vpop.f32.mrb[64].mxu1 }
0x10d6   :  { %v3593_v37 = vpack.i.bf16 %v2381_v33, %v2333_v24  ;;  %v3472_v38 = vpop.f32.mrb[65].mxu1 }
0x10d7   :  { %v2384_v39 = vpop.f32.mrb[66].mxu1 }
0x10d8   :  { %v3473_v40 = vpop.f32.mrb[67].mxu1  ;;  %3594 = vrot.lane.b32.xlu0 %v3593_v37, %s4601_s5  ;;  %v3619_v39 = vld [vmem:[%s4572_s11 + $0x20] sm:$0xff]  }
0x10d9   :  { %v3620_v40 = vld [vmem:[%s4572_s11 + $0x28] sm:$0xff]  }
0x10dd   :  { %v2477_v41 = vpop.f32.mrb[68].mxu1 }
0x10de   :  { %v3598_v43 = vpack.i.bf16 %v2477_v41, %v2429_v42  ;;  %v3484_v31 = vpop.f32.mrb[69].mxu1  ;;  %v3129_v42 = vld [vmem:[%s4568_s7 + $0x1] ss:$0 sm:$0xff]  ;;  %v3621_v41 = vld [vmem:[%s4572_s11 + $0x30] sm:$0xff]  }
0x10df   :  { %v2480_v32 = vpop.f32.mrb[70].mxu1  ;;  %v3131_v31 = vld [vmem:[%s4571_s10 + $0x1] ss:$0 sm:$0xff] }
0x10e0   :  { %v3485_v45 = vpop.f32.mrb[71].mxu1  ;;  %3599 = vrot.lane.b32.xlu1 %v3598_v43, %s4602_s23  ;;  %v3622_v43 = vld [vmem:[%s4572_s11 + $0x38] sm:$0xff]  }
0x1115   :  { %v3590_v46 = vpop.permute.xlu1 %3589 }
0x1116   :  { %v3592_v48 = vunpack.i.h.bf16 %v3590_v46  ;;  %v3591_v34 = vunpack.i.l.bf16 %v3590_v46 }
0x1118   :  { %v2508_v62 = vsel %vm253_vm2, %v2189_v3, %v3592_v48  ;;  %v2507_v22 = vsel %vm253_vm2, %v2141_v10, %v3591_v34 }
0x114a   :  { %v3595_v47 = vpop.permute.xlu0 %3594 }
0x114b   :  { %v3597_v49 = vunpack.i.h.bf16 %v3595_v47  ;;  %v3596_v52 = vunpack.i.l.bf16 %v3595_v47 }
0x114d   :  { %v2510_v55 = vsel %vm1158_vm4, %v2508_v62, %v3597_v49  ;;  %v2509_v44 = vsel %vm1158_vm4, %v2507_v22, %v3596_v52 }
0x1152   :  { %v3600_v53 = vpop.permute.xlu1 %3599 }
0x1153   :  { %v3602_v50 = vunpack.i.h.bf16 %v3600_v53  ;;  %v3601_v23 = vunpack.i.l.bf16 %v3600_v53 }
0x1155   :  { %v2512_v54 = vsel %vm1161_vm5, %v2510_v55, %v3602_v50  ;;  %v2511_v57 = vsel %vm1161_vm5, %v2509_v44, %v3601_v23 }
0x1156   :  { %v2513_v58 = vpack.c.bf16 %v2512_v54, %v2511_v57 }
0x1158   :  { %3491 = vmatmul.mubr.msk.bf16.vlgmr.msra.gmra.mrb[76].mxu0 %vm87_vm0, %v2513_v58 }
0x1159   :  { %3510 = vmatprep.mubr.msk.bf16.mxu0 %vm3789_vm1, %v3788_v15  ;;  %3503 = vmatpush3.bf16.msra.mxu0 %v3619_v39 }
0x115a   :  { %3504 = vmatprep.subr.bf16.mxu0 %v3788_v15 }
0x115d   :  { %3505 = vmatpush3.bf16.msra.mxu0 %v3620_v40 }
0x115e   :  { %3506 = vmatprep.subr.bf16.mxu0 %v3788_v15 }
0x1161   :  { %3507 = vmatpush3.bf16.msra.mxu0 %v3621_v41 }
0x1162   :  { %3508 = vmatprep.subr.bf16.mxu0 %v3788_v15 }
0x1165   :  { %3509 = vmatpush3.bf16.msra.mxu0 %v3622_v43  ;;  %v3142_v43 = vld [vmem:[%s4575_s14 + $0x1] ss:$0 sm:$0xff] }
0x122b   :  { %v2569_v60 = vpop.f32.mrb[76].mxu0 }
0x122c   :  { %v2570_v63 = vadd.f32 %v3125_v59, %v2569_v60  ;;  %v3492_v0 = vpop.f32.mrb[77].mxu0 }
0x122d   :  { %v2572_v1 = vpop.f32.mrb[78].mxu0 }
0x122e   :  { %v2573_v2 = vadd.f32 %v3125_v59, %v2572_v1  ;;  %v3493_v56 = vpop.f32.mrb[79].mxu0  ;;  %v2576_v4 = vadd.f32 %v2570_v63, %v4230_v6 }
0x1230   :  { %v2578_v3 = vsel %vm87_vm0, %v2576_v4, 0.0  ;;  %v2577_v5 = vadd.f32 %v2573_v2, %v4232_v7  ;;  %v3617_v7 = vld [vmem:[%s4570_s9 + $0x10] sm:$0xff]  }
0x1231   :  { %2579 = vadd.xlane.f32.xlu0 %v2578_v3  ;;  %3495 = vmatpush3.bf16.msra.mxu1 %v3617_v7 }
0x1232   :  { %v2581_v8 = vsel %vm87_vm0, %v2577_v5, 0.0  ;;  %3496 = vmatprep.subr.bf16.mxu1 %v3788_v15 }
0x1233   :  { %2582 = vadd.xlane.f32.xlu1 %v2581_v8 }
0x1235   :  { %3497 = vmatpush3.bf16.msra.mxu1 %v3618_v14 }
0x1236   :  { %3514 = vmatprep.subr.bf16.mxu1 %v3788_v15 }
0x12be   :  { %v2580_v9 = vpop.xlane.xlu0 %2579 }
0x12bf   :  { %v2584_v10 = vmul.f32 0.03125, %v2580_v9 }
0x12c0   :  { %v2583_v11 = vpop.xlane.xlu1 %2582 }
0x12c1   :  { %v2586_v61 = vsub.f32 %v2576_v4, %v2584_v10  ;;  %v2585_v12 = vmul.f32 0.03125, %v2583_v11  ;;  %v3135_v4 = vld [vmem:[%s4573_s12 + $0x1] ss:$0 sm:$0xff] }
0x12c3   :  { %v2587_v13 = vsub.f32 %v2577_v5, %v2585_v12  ;;  %v2588_v16 = vmul.f32 %v2586_v61, %v2586_v61 }
0x12c5   :  { %v2590_v17 = vsel %vm87_vm0, %v2588_v16, 0.0  ;;  %v2589_v51 = vmul.f32 %v2587_v13, %v2587_v13 }
0x12c6   :  { %2591 = vadd.xlane.f32.xlu0 %v2590_v17 }
0x12c7   :  { %v2593_v6 = vsel %vm87_vm0, %v2589_v51, 0.0 }
0x12ca   :  { %2594 = vadd.xlane.f32.xlu0 %v2593_v6 }
0x1353   :  { %v2592_v18 = vpop.xlane.xlu0 %2591 }
0x1354   :  { %v2596_v19 = vmul.f32 0.03125, %v2592_v18 }
0x1356   :  { %v2598_v20 = vadd.f32 1e-05, %v2596_v19 }
0x1357   :  { %v2595_v21 = vpop.xlane.xlu0 %2594 }
0x1358   :  { %3707 = vrsqrt.f32 %v2598_v20  ;;  %v2597_v24 = vmul.f32 0.03125, %v2595_v21 }
0x135a   :  { %v2599_v27 = vadd.f32 1e-05, %v2597_v24 }
0x135c   :  { %3709 = vrsqrt.f32 %v2599_v27  ;;  %v3623_v27 = vld [vmem:[%s4576_s15] sm:$0xff]  }
0x1362   :  { %v3708_v25 = vpop.eup %3707 }
0x1363   :  { %v2602_v35 = vmul.f32 %v3708_v25, %v2586_v61  ;;  %v3624_v25 = vld [vmem:[%s4576_s15 + $0x8] sm:$0xff]  }
0x1365   :  { %v2610_v29 = vmul.f32 %v3129_v42, %v2602_v35 }
0x1366   :  { %v3710_v26 = vpop.eup %3709 }
0x1367   :  { %v2603_v28 = vmul.f32 %v3710_v26, %v2587_v13  ;;  %v2618_v36 = vadd.f32 %v3130_v30, %v2610_v29 }
0x1369   :  { %v2611_v33 = vmul.f32 %v3129_v42, %v2603_v28 }
0x136b   :  { %v2619_v37 = vadd.f32 %v3130_v30, %v2611_v33 }
0x136d   :  { %v2620_v38 = vpack.c.bf16 %v2619_v37, %v2618_v36 }
0x136f   :  { %3499 = vmatmul.mubr.msk.bf16.vlgmr.msra.gmra.mrb[72].mxu1 %vm87_vm0, %v2620_v38  ;;  %v3141_v38 = vld [vmem:[%s4574_s13 + $0x1] ss:$0 sm:$0xff] }
0x1370   :  { %3518 = vmatprep.mubr.msk.bf16.mxu1 %vm3789_vm1, %v3788_v15  ;;  %3515 = vmatpush3.bf16.msra.mxu1 %v3623_v27 }
0x1371   :  { %3516 = vmatprep.subr.bf16.mxu1 %v3788_v15 }
0x1374   :  { %3517 = vmatpush3.bf16.msra.mxu1 %v3624_v25 }
0x1375   :  { %3522 = vmatprep.subr.bf16.mxu1 %v3788_v15 }
0x1442   :  { %v2676_v32 = vpop.f32.mrb[72].mxu1 }
0x1443   :  { %v2677_v45 = vadd.f32 %v3131_v31, %v2676_v32  ;;  %v3500_v46 = vpop.f32.mrb[73].mxu1 }
0x1444   :  { %v2679_v47 = vpop.f32.mrb[74].mxu1 }
0x1445   :  { %v2683_v48 = vmul.f32 %v2677_v45, %v2677_v45  ;;  %v2680_v34 = vadd.f32 %v3131_v31, %v2679_v47  ;;  %v3501_v49 = vpop.f32.mrb[75].mxu1 }
0x1446   :  { %v3143_v49 = vld [vmem:[%s4577_s16] ss:$0 sm:$0xff] }
0x1447   :  { %v2685_v52 = vmul.f32 %v2683_v48, %v2677_v45  ;;  %v2684_v53 = vmul.f32 %v2680_v34, %v2680_v34  ;;  %v3625_v48 = vld [vmem:[%s4578_s17] sm:$0xff]  }
0x1449   :  { %v2687_v62 = vmul.f32 0.044715, %v2685_v52  ;;  %v2686_v22 = vmul.f32 %v2684_v53, %v2680_v34 }
0x144b   :  { %v2689_v50 = vadd.f32 %v2687_v62, %v2677_v45  ;;  %v2688_v23 = vmul.f32 0.044715, %v2686_v22 }
0x144d   :  { %v2691_v55 = vmul.f32 0.7978846, %v2689_v50  ;;  %v2690_v44 = vadd.f32 %v2688_v23, %v2680_v34 }
0x144f   :  { %3711 = vtanh.f32 %v2691_v55  ;;  %v2692_v54 = vmul.f32 0.7978846, %v2690_v44  ;;  %v2974_v44 = vlaneseq }
0x1451   :  { %3713 = vtanh.f32 %v2692_v54  ;;  %v2975_v54 = vand.u32 127, %v2974_v44 }
0x1459   :  { %v3712_v57 = vpop.eup %3711 }
0x145a   :  { %v2695_v58 = vadd.f32 1.0, %v3712_v57  ;;  %v2977_v57 = vshrl.u32 %v2974_v44, 7 }
0x145b   :  { %v3714_v59 = vpop.eup %3713 }
0x145c   :  { %v2697_v60 = vmul.f32 0.5, %v2695_v58  ;;  %v2696_v63 = vadd.f32 1.0, %v3714_v59  ;;  %v2980_v58 = vstv %s2979_s26  ;;  %v2987_v59 = vstv %s3151_s27 }
0x145d   :  { %vm2978_vm8 = vcmp.eq.s32.totalorder %v2977_v57, 0  ;;  %vm2981_vm9 = vcmp.eq.s32.totalorder %v2975_v54, %v2980_v58  ;;  %vm2985_vm10 = vcmp.eq.s32.totalorder %v2977_v57, 1  ;;  %vm2988_vm11 = vcmp.eq.s32.totalorder %v2975_v54, %v2987_v59 }
0x145e   :  { %v2698_v0 = vmul.f32 0.5, %v2696_v63  ;;  %v2699_v1 = vmul.f32 %v2697_v60, %v2677_v45  ;;  %vm2982_vm12 = vmand %vm2978_vm8, %vm2981_vm9 }
0x145f   :  { %vm2989_vm13 = vmand %vm2985_vm10, %vm2988_vm11  ;;  %v2983_v60 = vsel %vm2982_vm12, 1.0, %v3788_v15 }
0x1460   :  { %v2700_v2 = vmul.f32 %v2698_v0, %v2680_v34  ;;  %v3626_v34 = vld [vmem:[%s4578_s17 + $0x8] sm:$0xff]   ;;  %v2990_v63 = vsel %vm2989_vm13, 1.0, %v3788_v15  ;;  %v3147_v0 = vld [vmem:[%s4579_s18] ss:$0 sm:$0xff]  ;;  %s3798_s18 = smov [#allocation5]  }
0x1461   :  { %s3014_s7 = sshll.u32 %s3798_s18, 4  ;;  %s3015_s7 = int_to_ptr.vmem [resolvable:$true] %s3014_s7 }
0x1462   :  { %v2701_v56 = vpack.c.bf16 %v2700_v2, %v2699_v1  ;;  %v2991_v1 = vadd.f32 %v2990_v63, %v2983_v60  ;;  %s3737_s0 = scalar_lea.vmem %s3015_s7, 32  ;;  %p3742_p6 = scmp.lt.s32.totalorder %s3015_s7, %s3015_s7 }
0x1463   :  { %p3738_p5 = scmp.ne.s32.totalorder %s3015_s7, %s3737_s0  ;;  %p3743_p7 = scmp.lt.s32.totalorder %s3737_s0, %s3737_s0 }
0x1464   :  { %3511 = vmatmul.mubr.msk.bf16.vlgmr.msra.gmra.mrb[80].mxu0 %vm1383_vm6, %v2701_v56 }
0x1465   :  { %p3744_p8 = por %p3743_p7, %p3742_p6 }
0x1467   :  { %p3745_p9 = pnand %p3744_p8, %p3738_p5 }
0x1537   :  { %v2769_v3 = vpop.f32.mrb[80].mxu0 }
0x1538   :  { %v2770_v5 = vadd.f32 %v3135_v4, %v2769_v3  ;;  %v3512_v8 = vpop.f32.mrb[81].mxu0 }
0x1539   :  { %v2772_v9 = vpop.f32.mrb[82].mxu0 }
0x153a   :  { %v2773_v10 = vadd.f32 %v3135_v4, %v2772_v9  ;;  %v3513_v11 = vpop.f32.mrb[83].mxu0  ;;  %v2776_v61 = vadd.f32 %v2770_v5, %v2618_v36 }
0x153c   :  { %v2778_v12 = vsel %vm87_vm0, %v2776_v61, 0.0  ;;  %v2777_v13 = vadd.f32 %v2773_v10, %v2619_v37 }
0x153d   :  { %2779 = vadd.xlane.f32.xlu1 %v2778_v12 }
0x153e   :  { %v2781_v16 = vsel %vm87_vm0, %v2777_v13, 0.0 }
0x153f   :  { %2782 = vadd.xlane.f32.xlu0 %v2781_v16 }
0x15ca   :  { %v2780_v17 = vpop.xlane.xlu1 %2779 }
0x15cb   :  { %v2784_v51 = vmul.f32 0.03125, %v2780_v17 }
0x15cc   :  { %v2783_v6 = vpop.xlane.xlu0 %2782 }
0x15cd   :  { %v2786_v7 = vsub.f32 %v2776_v61, %v2784_v51  ;;  %v2785_v14 = vmul.f32 0.03125, %v2783_v6 }
0x15cf   :  { %v2787_v18 = vsub.f32 %v2777_v13, %v2785_v14  ;;  %v2788_v19 = vmul.f32 %v2786_v7, %v2786_v7 }
0x15d1   :  { %v2790_v20 = vsel %vm87_vm0, %v2788_v19, 0.0  ;;  %v2789_v21 = vmul.f32 %v2787_v18, %v2787_v18 }
0x15d2   :  { %2791 = vadd.xlane.f32.xlu1 %v2790_v20 }
0x15d3   :  { %v2793_v24 = vsel %vm87_vm0, %v2789_v21, 0.0 }
0x15d4   :  { %2794 = vadd.xlane.f32.xlu0 %v2793_v24 }
0x165f   :  { %v2792_v35 = vpop.xlane.xlu1 %2791 }
0x1660   :  { %v2796_v42 = vmul.f32 0.03125, %v2792_v35 }
0x1661   :  { %v2795_v26 = vpop.xlane.xlu0 %2794 }
0x1662   :  { %v2798_v29 = vadd.f32 1e-05, %v2796_v42  ;;  %v2797_v28 = vmul.f32 0.03125, %v2795_v26 }
0x1664   :  { %3715 = vrsqrt.f32 %v2798_v29  ;;  %v2799_v30 = vadd.f32 1e-05, %v2797_v28 }
0x1666   :  { %3717 = vrsqrt.f32 %v2799_v30 }
0x166e   :  { %v3716_v33 = vpop.eup %3715 }
0x166f   :  { %v2802_v36 = vmul.f32 %v3716_v33, %v2786_v7 }
0x1670   :  { %v3718_v37 = vpop.eup %3717 }
0x1671   :  { %v2803_v39 = vmul.f32 %v3718_v37, %v2787_v18  ;;  %v2810_v40 = vmul.f32 %v3141_v38, %v2802_v36 }
0x1673   :  { %v2811_v41 = vmul.f32 %v3141_v38, %v2803_v39  ;;  %v2818_v32 = vadd.f32 %v3142_v43, %v2810_v40 }
0x1675   :  { %v2819_v31 = vadd.f32 %v3142_v43, %v2811_v41 }
0x1677   :  { %v2821_v45 = vrot.slane %v2819_v31, 7 }
0x1679   :  { %v2824_v46 = vsel %vm2823_vm7, %v2818_v32, %v2821_v45 }
0x167a   :  { %v2825_v47 = vpack.c.bf16 %v2824_v46, %v2824_v46 }
0x167c   :  { %3519 = vmatmul.mubr.msk.bf16.vlgmr.msra.gmra.mrb[76].mxu1 %vm87_vm0, %v2825_v47 }
0x167d   :  { %3526 = vmatprep.mubr.msk.bf16.mxu1 %vm3789_vm1, %v3788_v15  ;;  %3523 = vmatpush3.bf16.msra.mxu1 %v3625_v48 }
0x167e   :  { %3524 = vmatprep.subr.bf16.mxu1 %v3788_v15 }
0x1681   :  { %3525 = vmatpush3.bf16.msra.mxu1 %v3626_v34 }
0x174f   :  { %v2886_v52 = vpop.f32.mrb[76].mxu1 }
0x1750   :  { %v2887_v53 = vadd.f32 %v3143_v49, %v2886_v52  ;;  %v3520_v62 = vpop.f32.mrb[77].mxu1 }
0x1751   :  { %v2889_v22 = vpop.f32.mrb[78].mxu1 }
0x1752   :  { %3719 = vtanh.f32 %v2887_v53  ;;  %v3521_v50 = vpop.f32.mrb[79].mxu1 }
0x175c   :  { %v3720_v23 = vpop.eup %3719 }
0x175d   :  { %v2893_v55 = vpack.c.bf16 %v3720_v23, %v3720_v23 }
0x175f   :  { %3527 = vmatmul.mubr.msk.bf16.vlgmr.msra.gmra.mrb[80].mxu1 %vm87_vm0, %v2893_v55 }
0x1832   :  { %v2954_v2 = vpop.f32.mrb[80].mxu1 }
0x1833   :  { %v2955_v56 = vadd.f32 %v3147_v0, %v2954_v2  ;;  %v3528_v4 = vpop.f32.mrb[81].mxu1 }
0x1834   :  { %v2957_v3 = vpop.f32.mrb[82].mxu1 }
0x1835   :  { %v3529_v5 = vpop.f32.mrb[83].mxu1  ;;  %v2962_v8 = vsel %vm2960_vm14, %v2955_v56, -inf  ;;  %2961 = vst.msk [vmem:[#allocation5] sm:$0x3] %vm2960_vm14, %v2955_v56  ;;  %v2992_v9 = vmul.f32 %v2991_v1, %v2955_v56 }
0x1836   :  { %2963 = vmax.xlane.f32.xlu0 %v2962_v8 }
0x1837   :  { %v2993_v10 = vsel %vm2960_vm14, %v2992_v9, 0.0 }
0x183a   :  { %2994 = vadd.xlane.f32.xlu0 %v2993_v10 }
0x18c3   :  { %v2964_v15 = vpop.xlane.xlu0 %2963 }
0x18c4   :  { %v2965_v11 = vsub.f32 %v2955_v56, %v2964_v15 }
0x18c6   :  { %v2966_v61 = vmul.f32 1.442695, %v2965_v11 }
0x18c8   :  { %3721 = vpow2.f32 %v2966_v61 }
0x18d2   :  { %v3722_v12 = vpop.eup %3721 }
0x18d3   :  { %v2968_v13 = vsel %vm2960_vm14, %v3722_v12, 0.0 }
0x18d4   :  { %2969 = vadd.xlane.f32.xlu1 %v2968_v13 }
0x18d5   :  { %3748 = shalt.err (!%p3745_p9)
}
0x18d6   :  { %s3749_s19 = scalar_lea.hbm %s4581_s20, 32 }
0x18d7   :  { %p3750_p10 = scmp.ne.s32.totalorder %s4581_s20, %s3749_s19  ;;  %p3753_p11 = scmp.lt.u32.totalorder %s3749_s19, %s4581_s20 }
0x18d9   :  { %p3755_p12 = pnand %p3753_p11, %p3750_p10 }
0x18db   :  { %3758 = shalt.err (!%p3755_p12)
}
0x18dc   :  { %3017 = dma.vmem_to_hbm [thread:$0]  %s3015_s7, 32, %s4581_s20, [#allocation3]   ;;  %v2995_v7 = vpop.xlane.xlu0 %2994  ;;  %vm2997_vm15 = vcmask 1041408   ;;  %vm3006_vm0 = vcmask 0  }
0x18dd   :  { %s3799_s1 = smov [#allocation6]  }
0x18de   :  { %s3024_s25 = sshll.u32 %s3799_s1, 4  ;;  %s3025_s25 = int_to_ptr.vmem [resolvable:$true] %s3024_s25 }
0x18df   :  { %s3759_s20 = scalar_lea.vmem %s3025_s25, 16  ;;  %s3763_s6 = scalar_lea.vmem %s3025_s25, 32 }
0x18e0   :  { %p3760_p13 = scmp.ne.s32.totalorder %s3025_s25, %s3759_s20  ;;  %p3764_p0 = scmp.lt.s32.totalorder %s3025_s25, %s3025_s25 }
0x18e1   :  { %p3765_p1 = scmp.lt.s32.totalorder %s3763_s6, %s3759_s20 }
0x18e3   :  { %p3766_p2 = por %p3765_p1, %p3764_p0 }
0x18e5   :  { %p3767_p3 = pnand %p3766_p2, %p3760_p13 }
0x1961   :  { %v2970_v16 = vpop.xlane.xlu1 %2969 }
0x1962   :  { %3723 = vlog2.f32 %v2970_v16 }
0x196c   :  { %v3724_v17 = vpop.eup %3723 }
0x196d   :  { %v2972_v51 = vmul.f32 0.6931472, %v3724_v17 }
0x196f   :  { %v2973_v6 = vadd.f32 %v2972_v51, %v2964_v15 }
0x1971   :  { %v2996_v14 = vsub.f32 %v2973_v6, %v2995_v7 }
0x1973   :  { %v2998_v18 = vsel %vm2997_vm15, %v2996_v14, 0.0 }
0x1974   :  { %v2999_v19 = vrot.slane %v2998_v18, 4 }
0x1976   :  { %v3000_v20 = vadd.f32 %v2999_v19, %v2998_v18 }
0x1978   :  { %v3001_v21 = vrot.slane %v3000_v20, 2 }
0x197a   :  { %v3002_v24 = vadd.f32 %v3001_v21, %v3000_v20 }
0x197c   :  { %v3003_v27 = vrot.slane %v3002_v24, 1 }
0x197e   :  { %v3004_v25 = vadd.f32 %v3003_v27, %v3002_v24 }
0x1980   :  { %v3005_v35 = vmul.f32 0.5, %v3004_v25 }
0x1982   :  { %3007 = vst.msk [vmem:[#allocation6] sm:$0x1] %vm3006_vm0, %v3005_v35 }
0x1983   :  { %3770 = shalt.err (!%p3767_p3)
}
0x1984   :  { %s3771_s15 = scalar_lea.hbm %s4582_s21, 16 }
0x1985   :  { %p3772_p4 = scmp.ne.s32.totalorder %s4582_s21, %s3771_s15  ;;  %p3775_p5 = scmp.lt.u32.totalorder %s3771_s15, %s4582_s21 }
0x1987   :  { %p3777_p6 = pnand %p3775_p5, %p3772_p4 }
0x1989   :  { %3780 = shalt.err (!%p3777_p6)
}
0x198a   :  { %3027 = dma.vmem_to_hbm [thread:$0]  %s3025_s25, 16, %s4582_s21, [#allocation7]  }
0x198b   :  { %3783 = dma.done.wait [#allocation3], 32  }
0x198c   :  { %3784 = vsyncadd [#allocation3], 4294967264 }
0x198d   :  { %3785 = dma.done.wait [#allocation7], 16  }
0x198e   :  { %3786 = vsyncadd [#allocation7], 4294967280 }
0x198f   :  { %3034 = vsyncpa [#allocation3], 1 }
0x1990   :  { %3035 = vsyncpa [#allocation7], 1 }
0x1991   :  { %3036 = vsyncpa [#allocation4], 1 }

</bundles_post_ra>
